<compile_context>
chip_gen: v6e
topology: v6e:2x2x1
jax: 0.10.0
libtpu: 0.0.40
codegen_flags: <defaults>
</compile_context>

<pallas_src>
import functools

import jax
import jax.numpy as jnp
from jax.experimental import pallas as pl
from jax.experimental.pallas import tpu as pltpu


def rnn_predictor_kernel(
    x_ref,                 # (seq*B, E)
    h0_ref, c0_ref,        # (nlayers, B, H)
    w0_ref, b0_ref,        # (E, 4H), (1, 4H)   encoder folded into layer-0 gates
    w_ih_ref, b_ref,       # (nlayers, H, 4H), (nlayers, 1, 4H)  (layer 0 slots unused)
    w_hh_ref,              # (nlayers, H, 4H)
    dec_w_ref, dec_b_ref,  # (H, Dout), (1, Dout)
    dec_out_ref,           # (seq*B, Dout)
    h_n_ref, c_n_ref,      # (nlayers, B, H)
    seq_out_ref,           # VMEM scratch (seq*B, H): per-layer output sequence
    *, nlayers, hid, seq, batch,
):
    H = hid
    B = batch

    for l in range(nlayers):
        # ---- Input-gate matmul hoisted off the serial chain: all timesteps
        # in one MXU call.  Layer 0 uses the encoder-folded weights on the raw
        # input; layers >0 read the previous layer's full output sequence from
        # the scratch (inter-layer dropout == identity in eval mode).
        if l == 0:
            pre = (
                jnp.dot(x_ref[...], w0_ref[...], preferred_element_type=jnp.float32)
                + b0_ref[...]
            )  # (seq*B, 4H)
        else:
            pre = (
                jnp.dot(seq_out_ref[...], w_ih_ref[l],
                        preferred_element_type=jnp.float32)
                + b_ref[l]
            )  # (seq*B, 4H)

        w_hh_l = w_hh_ref[l]          # hoisted: read once per layer, not per step
        h_l = h0_ref[l]               # (B, H)
        c_l = c0_ref[l]               # (B, H)

        # ---- Serial recurrence: only the small (B,H)@(H,4H) recurrent matmul
        # plus elementwise work per step.  Statically unrolled (seq is small).
        for t in range(seq):
            gates = pre[t * B:(t + 1) * B, :] + jnp.dot(
                h_l, w_hh_l, preferred_element_type=jnp.float32
            )  # (B, 4H), gate order i, f, g, o (PyTorch convention)

            # One sigmoid + one tanh over the full 4H=128-lane gates vreg,
            # gate selection by static lane slice (3 EUP pushes per step).
            sig = jax.nn.sigmoid(gates)
            tnh = jnp.tanh(gates)
            i_g = sig[:, 0 * H:1 * H]
            f_g = sig[:, 1 * H:2 * H]
            g_g = tnh[:, 2 * H:3 * H]
            o_g = sig[:, 3 * H:4 * H]

            c_l = f_g * c_l + i_g * g_g
            h_l = o_g * jnp.tanh(c_l)

            # Static-offset scratch write (B is a multiple of 8 sublanes):
            # becomes this layer's output sequence / next layer's input.
            seq_out_ref[t * B:(t + 1) * B, :] = h_l

        # Final recurrent state written straight to the outputs.
        h_n_ref[l] = h_l
        c_n_ref[l] = c_l

    # ---- Deferred decoder: one matmul + sigmoid + one store. ----------------
    dec = (
        jnp.dot(seq_out_ref[...], dec_w_ref[...], preferred_element_type=jnp.float32)
        + dec_b_ref[...]
    )
    dec_out_ref[...] = jax.nn.sigmoid(dec)


def rnn_predictor_forward(x, h0, c0, params):
    seq, B, E = x.shape
    nlayers, _, H = h0.shape
    Dout = params["dec_w_t"].shape[1]

    # Pad batch up to the 8-sublane granularity (and a place to pack
    # independent sequences).  Padded rows never interact with real rows.
    B_pad = max(8, ((B + 7) // 8) * 8)
    if B_pad != B:
        pad = B_pad - B
        x = jnp.pad(x, ((0, 0), (0, pad), (0, 0)))
        h0 = jnp.pad(h0, ((0, 0), (0, pad), (0, 0)))
        c0 = jnp.pad(c0, ((0, 0), (0, pad), (0, 0)))

    x2d = x.reshape(seq * B_pad, E)

    # Host-side parameter fusion (outside the kernel):
    #   * single gate bias per layer,
    #   * encoder folded into layer-0 input weights/bias
    #     (eval dropout = identity, res_connection = False).
    b_cat = params["b_ih"] + params["b_hh"]                       # (L, 1, 4H)
    w0 = params["enc_w_t"] @ params["w_ih_t"][0]                  # (E, 4H)
    b0 = b_cat[0] + params["enc_b"] @ params["w_ih_t"][0]         # (1, 4H)

    kernel = functools.partial(
        rnn_predictor_kernel, nlayers=nlayers, hid=H, seq=seq, batch=B_pad
    )

    vmem = pl.BlockSpec(memory_space=pltpu.MemorySpace.VMEM)

    dec2d, h_n, c_n = pl.pallas_call(
        kernel,
        out_shape=(
            jax.ShapeDtypeStruct((seq * B_pad, Dout), jnp.float32),
            jax.ShapeDtypeStruct((nlayers, B_pad, H), jnp.float32),
            jax.ShapeDtypeStruct((nlayers, B_pad, H), jnp.float32),
        ),
        in_specs=[vmem] * 10,
        out_specs=(vmem, vmem, vmem),
        scratch_shapes=[pltpu.VMEM((seq * B_pad, H), jnp.float32)],
    )(
        x2d, h0, c0,
        w0, b0,
        params["w_ih_t"], b_cat,
        params["w_hh_t"],
        params["dec_w_t"], params["dec_b"],
    )

    dec = dec2d.reshape(seq, B_pad, Dout)[:, :B, :]
    return dec, h_n[:, :B, :], c_n[:, :B, :]


def init_params(key, enc_inp, rnn_inp, hid, dec_out, nlayers):
    assert rnn_inp == hid, "original forward() implicitly requires rnn_inp_size == rnn_hid_size"
    ks = jax.random.split(key, 8)
    initrange = 0.1
    lstm_rng = 1.0 / jnp.sqrt(hid)
    enc_rng = 1.0 / jnp.sqrt(enc_inp)
    # Stored pre-transposed: y = x @ W_t + b
    return {
        "enc_w_t": jax.random.uniform(ks[0], (enc_inp, rnn_inp), jnp.float32, -initrange, initrange),
        "enc_b": jax.random.uniform(ks[1], (1, rnn_inp), jnp.float32, -enc_rng, enc_rng),
        "w_ih_t": jax.random.uniform(ks[2], (nlayers, hid, 4 * hid), jnp.float32, -lstm_rng, lstm_rng),
        "w_hh_t": jax.random.uniform(ks[3], (nlayers, hid, 4 * hid), jnp.float32, -lstm_rng, lstm_rng),
        "b_ih": jax.random.uniform(ks[4], (nlayers, 1, 4 * hid), jnp.float32, -lstm_rng, lstm_rng),
        "b_hh": jax.random.uniform(ks[5], (nlayers, 1, 4 * hid), jnp.float32, -lstm_rng, lstm_rng),
        "dec_w_t": jax.random.uniform(ks[6], (hid, dec_out), jnp.float32, -initrange, initrange),
        "dec_b": jnp.zeros((1, dec_out), jnp.float32),
    }


def reference_forward(x, h0, c0, p):
    """Pure-JAX reference mirroring the PyTorch forward (eval mode)."""
    seq, B, E = x.shape
    nlayers, _, H = h0.shape
    emb = x.reshape(-1, E) @ p["enc_w_t"] + p["enc_b"]
    emb = emb.reshape(seq, B, H)
    h = [h0[l] for l in range(nlayers)]
    c = [c0[l] for l in range(nlayers)]
    outs = []
    for t in range(seq):
        layer_in = emb[t]
        for l in range(nlayers):
            gates = (layer_in @ p["w_ih_t"][l] + p["b_ih"][l]
                     + h[l] @ p["w_hh_t"][l] + p["b_hh"][l])
            i_g = jax.nn.sigmoid(gates[:, :H])
            f_g = jax.nn.sigmoid(gates[:, H:2 * H])
            g_g = jnp.tanh(gates[:, 2 * H:3 * H])
            o_g = jax.nn.sigmoid(gates[:, 3 * H:])
            c[l] = f_g * c[l] + i_g * g_g
            h[l] = o_g * jnp.tanh(c[l])
            layer_in = h[l]
        outs.append(layer_in)
    out = jnp.stack(outs)
    dec = out.reshape(-1, H) @ p["dec_w_t"] + p["dec_b"]
    dec = jax.nn.sigmoid(dec.reshape(seq, B, -1))
    return dec, jnp.stack(h), jnp.stack(c)


if __name__ == "__main__":
    # Small, deterministic config: RNNPredictor('LSTM', enc_inp=4, rnn_inp=32,
    # rnn_hid=32, dec_out=4, nlayers=2, dropout -> eval, res_connection=False)
    SEQ, BATCH = 8, 2
    ENC_INP, HID, DEC_OUT, NLAYERS = 4, 32, 4, 2

    key = jax.random.PRNGKey(0)
    k_p, k_x = jax.random.split(key)
    params = init_params(k_p, ENC_INP, HID, HID, DEC_OUT, NLAYERS)

    x = jax.random.normal(k_x, (SEQ, BATCH, ENC_INP), jnp.float32)
    h0 = jnp.zeros((NLAYERS, BATCH, HID), jnp.float32)  # init_hidden()
    c0 = jnp.zeros((NLAYERS, BATCH, HID), jnp.float32)

    decoded, h_n, c_n = rnn_predictor_forward(x, h0, c0, params)
    jax.block_until_ready((decoded, h_n, c_n))

    ref_dec, ref_h, ref_c = reference_forward(x, h0, c0, params)
    assert jnp.allclose(decoded, ref_dec, rtol=1e-4, atol=1e-4)
    assert jnp.allclose(h_n, ref_h, rtol=1e-4, atol=1e-4)
    assert jnp.allclose(c_n, ref_c, rtol=1e-4, atol=1e-4)

    print("KERNEL_OK")
</pallas_src>

<mosaic_0001>
module attributes {stable_mosaic.version = 11 : i64} {
  func.func @rnn_predictor_kernel(%arg0: memref<64x4xf32, #tpu.memory_space<vmem>>, %arg1: memref<2x8x32xf32, #tpu.memory_space<vmem>>, %arg2: memref<2x8x32xf32, #tpu.memory_space<vmem>>, %arg3: memref<4x128xf32, #tpu.memory_space<vmem>>, %arg4: memref<1x128xf32, #tpu.memory_space<vmem>>, %arg5: memref<2x32x128xf32, #tpu.memory_space<vmem>>, %arg6: memref<2x1x128xf32, #tpu.memory_space<vmem>>, %arg7: memref<2x32x128xf32, #tpu.memory_space<vmem>>, %arg8: memref<32x4xf32, #tpu.memory_space<vmem>>, %arg9: memref<1x4xf32, #tpu.memory_space<vmem>>, %arg10: memref<64x4xf32, #tpu.memory_space<vmem>>, %arg11: memref<2x8x32xf32, #tpu.memory_space<vmem>>, %arg12: memref<2x8x32xf32, #tpu.memory_space<vmem>>, %arg13: memref<64x32xf32, #tpu.memory_space<vmem>>) attributes {dimension_semantics = [], scalar_prefetch = 0 : i64, scratch_operands = 1 : i64, tpu.core_type = #tpu.core_type<tc>} {
    %c0 = arith.constant 0 : index
    %c0_0 = arith.constant 0 : index
    %0 = vector.load %arg0[%c0, %c0_0] : memref<64x4xf32, #tpu.memory_space<vmem>>, vector<64x4xf32>
    %c0_1 = arith.constant 0 : index
    %c0_2 = arith.constant 0 : index
    %1 = vector.load %arg3[%c0_1, %c0_2] : memref<4x128xf32, #tpu.memory_space<vmem>>, vector<4x128xf32>
    %cst = arith.constant dense<0.000000e+00> : vector<64x128xf32>
    %2 = tpu.matmul %0, %1, %cst {dimension_numbers = #tpu.dot_dimension_numbers<[1], [0], [0], [1], [0, 0, 1, 1], [], []>} : vector<64x4xf32>, vector<4x128xf32>, vector<64x128xf32> -> vector<64x128xf32>
    %c0_3 = arith.constant 0 : index
    %c0_4 = arith.constant 0 : index
    %3 = vector.load %arg4[%c0_3, %c0_4] : memref<1x128xf32, #tpu.memory_space<vmem>>, vector<1x128xf32>
    %4 = vector.broadcast %3 : vector<1x128xf32> to vector<64x128xf32>
    %5 = arith.addf %2, %4 : vector<64x128xf32>
    %c0_5 = arith.constant 0 : index
    %c0_6 = arith.constant 0 : index
    %c0_7 = arith.constant 0 : index
    %6 = vector.load %arg7[%c0_5, %c0_6, %c0_7] : memref<2x32x128xf32, #tpu.memory_space<vmem>>, vector<1x32x128xf32>
    %7 = vector.shape_cast %6 : vector<1x32x128xf32> to vector<32x128xf32>
    %c0_8 = arith.constant 0 : index
    %c0_9 = arith.constant 0 : index
    %c0_10 = arith.constant 0 : index
    %8 = vector.load %arg1[%c0_8, %c0_9, %c0_10] : memref<2x8x32xf32, #tpu.memory_space<vmem>>, vector<1x8x32xf32>
    %9 = vector.shape_cast %8 : vector<1x8x32xf32> to vector<8x32xf32>
    %c0_11 = arith.constant 0 : index
    %c0_12 = arith.constant 0 : index
    %c0_13 = arith.constant 0 : index
    %10 = vector.load %arg2[%c0_11, %c0_12, %c0_13] : memref<2x8x32xf32, #tpu.memory_space<vmem>>, vector<1x8x32xf32>
    %11 = vector.shape_cast %10 : vector<1x8x32xf32> to vector<8x32xf32>
    %12 = vector.extract_strided_slice %5 {offsets = [0, 0], sizes = [8, 128], strides = [1, 1]} : vector<64x128xf32> to vector<8x128xf32>
    %cst_14 = arith.constant dense<0.000000e+00> : vector<8x128xf32>
    %13 = tpu.matmul %9, %7, %cst_14 {dimension_numbers = #tpu.dot_dimension_numbers<[1], [0], [0], [1], [0, 0, 1, 1], [], []>} : vector<8x32xf32>, vector<32x128xf32>, vector<8x128xf32> -> vector<8x128xf32>
    %14 = arith.addf %12, %13 : vector<8x128xf32>
    %15 = arith.negf %14 : vector<8x128xf32>
    %16 = math.exp %15 : vector<8x128xf32>
    %cst_15 = arith.constant 1.000000e+00 : f32
    %17 = vector.broadcast %cst_15 : f32 to vector<8x128xf32>
    %18 = arith.addf %17, %16 : vector<8x128xf32>
    %19 = arith.divf %17, %18 : vector<8x128xf32>
    %20 = math.tanh %14 : vector<8x128xf32>
    %21 = vector.extract_strided_slice %19 {offsets = [0, 0], sizes = [8, 32], strides = [1, 1]} : vector<8x128xf32> to vector<8x32xf32>
    %22 = vector.extract_strided_slice %19 {offsets = [0, 32], sizes = [8, 32], strides = [1, 1]} : vector<8x128xf32> to vector<8x32xf32>
    %23 = vector.extract_strided_slice %20 {offsets = [0, 64], sizes = [8, 32], strides = [1, 1]} : vector<8x128xf32> to vector<8x32xf32>
    %24 = vector.extract_strided_slice %19 {offsets = [0, 96], sizes = [8, 32], strides = [1, 1]} : vector<8x128xf32> to vector<8x32xf32>
    %25 = arith.mulf %22, %11 : vector<8x32xf32>
    %26 = arith.mulf %21, %23 : vector<8x32xf32>
    %27 = arith.addf %25, %26 : vector<8x32xf32>
    %28 = math.tanh %27 : vector<8x32xf32>
    %29 = arith.mulf %24, %28 : vector<8x32xf32>
    %c0_16 = arith.constant 0 : index
    %c0_17 = arith.constant 0 : index
    %30 = vector.load %arg13[%c0_16, %c0_17] : memref<64x32xf32, #tpu.memory_space<vmem>>, vector<8x32xf32>
    tpu.vector_store %arg13[%c0_16, %c0_17], %29 {strides = array<i32>} : memref<64x32xf32, #tpu.memory_space<vmem>>, vector<8x32xf32>,
    %31 = vector.extract_strided_slice %5 {offsets = [8, 0], sizes = [8, 128], strides = [1, 1]} : vector<64x128xf32> to vector<8x128xf32>
    %cst_18 = arith.constant dense<0.000000e+00> : vector<8x128xf32>
    %32 = tpu.matmul %29, %7, %cst_18 {dimension_numbers = #tpu.dot_dimension_numbers<[1], [0], [0], [1], [0, 0, 1, 1], [], []>} : vector<8x32xf32>, vector<32x128xf32>, vector<8x128xf32> -> vector<8x128xf32>
    %33 = arith.addf %31, %32 : vector<8x128xf32>
    %34 = arith.negf %33 : vector<8x128xf32>
    %35 = math.exp %34 : vector<8x128xf32>
    %cst_19 = arith.constant 1.000000e+00 : f32
    %36 = vector.broadcast %cst_19 : f32 to vector<8x128xf32>
    %37 = arith.addf %36, %35 : vector<8x128xf32>
    %38 = arith.divf %36, %37 : vector<8x128xf32>
    %39 = math.tanh %33 : vector<8x128xf32>
    %40 = vector.extract_strided_slice %38 {offsets = [0, 0], sizes = [8, 32], strides = [1, 1]} : vector<8x128xf32> to vector<8x32xf32>
    %41 = vector.extract_strided_slice %38 {offsets = [0, 32], sizes = [8, 32], strides = [1, 1]} : vector<8x128xf32> to vector<8x32xf32>
    %42 = vector.extract_strided_slice %39 {offsets = [0, 64], sizes = [8, 32], strides = [1, 1]} : vector<8x128xf32> to vector<8x32xf32>
    %43 = vector.extract_strided_slice %38 {offsets = [0, 96], sizes = [8, 32], strides = [1, 1]} : vector<8x128xf32> to vector<8x32xf32>
    %44 = arith.mulf %41, %27 : vector<8x32xf32>
    %45 = arith.mulf %40, %42 : vector<8x32xf32>
    %46 = arith.addf %44, %45 : vector<8x32xf32>
    %47 = math.tanh %46 : vector<8x32xf32>
    %48 = arith.mulf %43, %47 : vector<8x32xf32>
    %c8 = arith.constant 8 : index
    %c0_20 = arith.constant 0 : index
    %49 = vector.load %arg13[%c8, %c0_20] : memref<64x32xf32, #tpu.memory_space<vmem>>, vector<8x32xf32>
    tpu.vector_store %arg13[%c8, %c0_20], %48 {strides = array<i32>} : memref<64x32xf32, #tpu.memory_space<vmem>>, vector<8x32xf32>,
    %50 = vector.extract_strided_slice %5 {offsets = [16, 0], sizes = [8, 128], strides = [1, 1]} : vector<64x128xf32> to vector<8x128xf32>
    %cst_21 = arith.constant dense<0.000000e+00> : vector<8x128xf32>
    %51 = tpu.matmul %48, %7, %cst_21 {dimension_numbers = #tpu.dot_dimension_numbers<[1], [0], [0], [1], [0, 0, 1, 1], [], []>} : vector<8x32xf32>, vector<32x128xf32>, vector<8x128xf32> -> vector<8x128xf32>
    %52 = arith.addf %50, %51 : vector<8x128xf32>
    %53 = arith.negf %52 : vector<8x128xf32>
    %54 = math.exp %53 : vector<8x128xf32>
    %cst_22 = arith.constant 1.000000e+00 : f32
    %55 = vector.broadcast %cst_22 : f32 to vector<8x128xf32>
    %56 = arith.addf %55, %54 : vector<8x128xf32>
    %57 = arith.divf %55, %56 : vector<8x128xf32>
    %58 = math.tanh %52 : vector<8x128xf32>
    %59 = vector.extract_strided_slice %57 {offsets = [0, 0], sizes = [8, 32], strides = [1, 1]} : vector<8x128xf32> to vector<8x32xf32>
    %60 = vector.extract_strided_slice %57 {offsets = [0, 32], sizes = [8, 32], strides = [1, 1]} : vector<8x128xf32> to vector<8x32xf32>
    %61 = vector.extract_strided_slice %58 {offsets = [0, 64], sizes = [8, 32], strides = [1, 1]} : vector<8x128xf32> to vector<8x32xf32>
    %62 = vector.extract_strided_slice %57 {offsets = [0, 96], sizes = [8, 32], strides = [1, 1]} : vector<8x128xf32> to vector<8x32xf32>
    %63 = arith.mulf %60, %46 : vector<8x32xf32>
    %64 = arith.mulf %59, %61 : vector<8x32xf32>
    %65 = arith.addf %63, %64 : vector<8x32xf32>
    %66 = math.tanh %65 : vector<8x32xf32>
    %67 = arith.mulf %62, %66 : vector<8x32xf32>
    %c16 = arith.constant 16 : index
    %c0_23 = arith.constant 0 : index
    %68 = vector.load %arg13[%c16, %c0_23] : memref<64x32xf32, #tpu.memory_space<vmem>>, vector<8x32xf32>
    tpu.vector_store %arg13[%c16, %c0_23], %67 {strides = array<i32>} : memref<64x32xf32, #tpu.memory_space<vmem>>, vector<8x32xf32>,
    %69 = vector.extract_strided_slice %5 {offsets = [24, 0], sizes = [8, 128], strides = [1, 1]} : vector<64x128xf32> to vector<8x128xf32>
    %cst_24 = arith.constant dense<0.000000e+00> : vector<8x128xf32>
    %70 = tpu.matmul %67, %7, %cst_24 {dimension_numbers = #tpu.dot_dimension_numbers<[1], [0], [0], [1], [0, 0, 1, 1], [], []>} : vector<8x32xf32>, vector<32x128xf32>, vector<8x128xf32> -> vector<8x128xf32>
    %71 = arith.addf %69, %70 : vector<8x128xf32>
    %72 = arith.negf %71 : vector<8x128xf32>
    %73 = math.exp %72 : vector<8x128xf32>
    %cst_25 = arith.constant 1.000000e+00 : f32
    %74 = vector.broadcast %cst_25 : f32 to vector<8x128xf32>
    %75 = arith.addf %74, %73 : vector<8x128xf32>
    %76 = arith.divf %74, %75 : vector<8x128xf32>
    %77 = math.tanh %71 : vector<8x128xf32>
    %78 = vector.extract_strided_slice %76 {offsets = [0, 0], sizes = [8, 32], strides = [1, 1]} : vector<8x128xf32> to vector<8x32xf32>
    %79 = vector.extract_strided_slice %76 {offsets = [0, 32], sizes = [8, 32], strides = [1, 1]} : vector<8x128xf32> to vector<8x32xf32>
    %80 = vector.extract_strided_slice %77 {offsets = [0, 64], sizes = [8, 32], strides = [1, 1]} : vector<8x128xf32> to vector<8x32xf32>
    %81 = vector.extract_strided_slice %76 {offsets = [0, 96], sizes = [8, 32], strides = [1, 1]} : vector<8x128xf32> to vector<8x32xf32>
    %82 = arith.mulf %79, %65 : vector<8x32xf32>
    %83 = arith.mulf %78, %80 : vector<8x32xf32>
    %84 = arith.addf %82, %83 : vector<8x32xf32>
    %85 = math.tanh %84 : vector<8x32xf32>
    %86 = arith.mulf %81, %85 : vector<8x32xf32>
    %c24 = arith.constant 24 : index
    %c0_26 = arith.constant 0 : index
    %87 = vector.load %arg13[%c24, %c0_26] : memref<64x32xf32, #tpu.memory_space<vmem>>, vector<8x32xf32>
    tpu.vector_store %arg13[%c24, %c0_26], %86 {strides = array<i32>} : memref<64x32xf32, #tpu.memory_space<vmem>>, vector<8x32xf32>,
    %88 = vector.extract_strided_slice %5 {offsets = [32, 0], sizes = [8, 128], strides = [1, 1]} : vector<64x128xf32> to vector<8x128xf32>
    %cst_27 = arith.constant dense<0.000000e+00> : vector<8x128xf32>
    %89 = tpu.matmul %86, %7, %cst_27 {dimension_numbers = #tpu.dot_dimension_numbers<[1], [0], [0], [1], [0, 0, 1, 1], [], []>} : vector<8x32xf32>, vector<32x128xf32>, vector<8x128xf32> -> vector<8x128xf32>
    %90 = arith.addf %88, %89 : vector<8x128xf32>
    %91 = arith.negf %90 : vector<8x128xf32>
    %92 = math.exp %91 : vector<8x128xf32>
    %cst_28 = arith.constant 1.000000e+00 : f32
    %93 = vector.broadcast %cst_28 : f32 to vector<8x128xf32>
    %94 = arith.addf %93, %92 : vector<8x128xf32>
    %95 = arith.divf %93, %94 : vector<8x128xf32>
    %96 = math.tanh %90 : vector<8x128xf32>
    %97 = vector.extract_strided_slice %95 {offsets = [0, 0], sizes = [8, 32], strides = [1, 1]} : vector<8x128xf32> to vector<8x32xf32>
    %98 = vector.extract_strided_slice %95 {offsets = [0, 32], sizes = [8, 32], strides = [1, 1]} : vector<8x128xf32> to vector<8x32xf32>
    %99 = vector.extract_strided_slice %96 {offsets = [0, 64], sizes = [8, 32], strides = [1, 1]} : vector<8x128xf32> to vector<8x32xf32>
    %100 = vector.extract_strided_slice %95 {offsets = [0, 96], sizes = [8, 32], strides = [1, 1]} : vector<8x128xf32> to vector<8x32xf32>
    %101 = arith.mulf %98, %84 : vector<8x32xf32>
    %102 = arith.mulf %97, %99 : vector<8x32xf32>
    %103 = arith.addf %101, %102 : vector<8x32xf32>
    %104 = math.tanh %103 : vector<8x32xf32>
    %105 = arith.mulf %100, %104 : vector<8x32xf32>
    %c32 = arith.constant 32 : index
    %c0_29 = arith.constant 0 : index
    %106 = vector.load %arg13[%c32, %c0_29] : memref<64x32xf32, #tpu.memory_space<vmem>>, vector<8x32xf32>
    tpu.vector_store %arg13[%c32, %c0_29], %105 {strides = array<i32>} : memref<64x32xf32, #tpu.memory_space<vmem>>, vector<8x32xf32>,
    %107 = vector.extract_strided_slice %5 {offsets = [40, 0], sizes = [8, 128], strides = [1, 1]} : vector<64x128xf32> to vector<8x128xf32>
    %cst_30 = arith.constant dense<0.000000e+00> : vector<8x128xf32>
    %108 = tpu.matmul %105, %7, %cst_30 {dimension_numbers = #tpu.dot_dimension_numbers<[1], [0], [0], [1], [0, 0, 1, 1], [], []>} : vector<8x32xf32>, vector<32x128xf32>, vector<8x128xf32> -> vector<8x128xf32>
    %109 = arith.addf %107, %108 : vector<8x128xf32>
    %110 = arith.negf %109 : vector<8x128xf32>
    %111 = math.exp %110 : vector<8x128xf32>
    %cst_31 = arith.constant 1.000000e+00 : f32
    %112 = vector.broadcast %cst_31 : f32 to vector<8x128xf32>
    %113 = arith.addf %112, %111 : vector<8x128xf32>
    %114 = arith.divf %112, %113 : vector<8x128xf32>
    %115 = math.tanh %109 : vector<8x128xf32>
    %116 = vector.extract_strided_slice %114 {offsets = [0, 0], sizes = [8, 32], strides = [1, 1]} : vector<8x128xf32> to vector<8x32xf32>
    %117 = vector.extract_strided_slice %114 {offsets = [0, 32], sizes = [8, 32], strides = [1, 1]} : vector<8x128xf32> to vector<8x32xf32>
    %118 = vector.extract_strided_slice %115 {offsets = [0, 64], sizes = [8, 32], strides = [1, 1]} : vector<8x128xf32> to vector<8x32xf32>
    %119 = vector.extract_strided_slice %114 {offsets = [0, 96], sizes = [8, 32], strides = [1, 1]} : vector<8x128xf32> to vector<8x32xf32>
    %120 = arith.mulf %117, %103 : vector<8x32xf32>
    %121 = arith.mulf %116, %118 : vector<8x32xf32>
    %122 = arith.addf %120, %121 : vector<8x32xf32>
    %123 = math.tanh %122 : vector<8x32xf32>
    %124 = arith.mulf %119, %123 : vector<8x32xf32>
    %c40 = arith.constant 40 : index
    %c0_32 = arith.constant 0 : index
    %125 = vector.load %arg13[%c40, %c0_32] : memref<64x32xf32, #tpu.memory_space<vmem>>, vector<8x32xf32>
    tpu.vector_store %arg13[%c40, %c0_32], %124 {strides = array<i32>} : memref<64x32xf32, #tpu.memory_space<vmem>>, vector<8x32xf32>,
    %126 = vector.extract_strided_slice %5 {offsets = [48, 0], sizes = [8, 128], strides = [1, 1]} : vector<64x128xf32> to vector<8x128xf32>
    %cst_33 = arith.constant dense<0.000000e+00> : vector<8x128xf32>
    %127 = tpu.matmul %124, %7, %cst_33 {dimension_numbers = #tpu.dot_dimension_numbers<[1], [0], [0], [1], [0, 0, 1, 1], [], []>} : vector<8x32xf32>, vector<32x128xf32>, vector<8x128xf32> -> vector<8x128xf32>
    %128 = arith.addf %126, %127 : vector<8x128xf32>
    %129 = arith.negf %128 : vector<8x128xf32>
    %130 = math.exp %129 : vector<8x128xf32>
    %cst_34 = arith.constant 1.000000e+00 : f32
    %131 = vector.broadcast %cst_34 : f32 to vector<8x128xf32>
    %132 = arith.addf %131, %130 : vector<8x128xf32>
    %133 = arith.divf %131, %132 : vector<8x128xf32>
    %134 = math.tanh %128 : vector<8x128xf32>
    %135 = vector.extract_strided_slice %133 {offsets = [0, 0], sizes = [8, 32], strides = [1, 1]} : vector<8x128xf32> to vector<8x32xf32>
    %136 = vector.extract_strided_slice %133 {offsets = [0, 32], sizes = [8, 32], strides = [1, 1]} : vector<8x128xf32> to vector<8x32xf32>
    %137 = vector.extract_strided_slice %134 {offsets = [0, 64], sizes = [8, 32], strides = [1, 1]} : vector<8x128xf32> to vector<8x32xf32>
    %138 = vector.extract_strided_slice %133 {offsets = [0, 96], sizes = [8, 32], strides = [1, 1]} : vector<8x128xf32> to vector<8x32xf32>
    %139 = arith.mulf %136, %122 : vector<8x32xf32>
    %140 = arith.mulf %135, %137 : vector<8x32xf32>
    %141 = arith.addf %139, %140 : vector<8x32xf32>
    %142 = math.tanh %141 : vector<8x32xf32>
    %143 = arith.mulf %138, %142 : vector<8x32xf32>
    %c48 = arith.constant 48 : index
    %c0_35 = arith.constant 0 : index
    %144 = vector.load %arg13[%c48, %c0_35] : memref<64x32xf32, #tpu.memory_space<vmem>>, vector<8x32xf32>
    tpu.vector_store %arg13[%c48, %c0_35], %143 {strides = array<i32>} : memref<64x32xf32, #tpu.memory_space<vmem>>, vector<8x32xf32>,
    %145 = vector.extract_strided_slice %5 {offsets = [56, 0], sizes = [8, 128], strides = [1, 1]} : vector<64x128xf32> to vector<8x128xf32>
    %cst_36 = arith.constant dense<0.000000e+00> : vector<8x128xf32>
    %146 = tpu.matmul %143, %7, %cst_36 {dimension_numbers = #tpu.dot_dimension_numbers<[1], [0], [0], [1], [0, 0, 1, 1], [], []>} : vector<8x32xf32>, vector<32x128xf32>, vector<8x128xf32> -> vector<8x128xf32>
    %147 = arith.addf %145, %146 : vector<8x128xf32>
    %148 = arith.negf %147 : vector<8x128xf32>
    %149 = math.exp %148 : vector<8x128xf32>
    %cst_37 = arith.constant 1.000000e+00 : f32
    %150 = vector.broadcast %cst_37 : f32 to vector<8x128xf32>
    %151 = arith.addf %150, %149 : vector<8x128xf32>
    %152 = arith.divf %150, %151 : vector<8x128xf32>
    %153 = math.tanh %147 : vector<8x128xf32>
    %154 = vector.extract_strided_slice %152 {offsets = [0, 0], sizes = [8, 32], strides = [1, 1]} : vector<8x128xf32> to vector<8x32xf32>
    %155 = vector.extract_strided_slice %152 {offsets = [0, 32], sizes = [8, 32], strides = [1, 1]} : vector<8x128xf32> to vector<8x32xf32>
    %156 = vector.extract_strided_slice %153 {offsets = [0, 64], sizes = [8, 32], strides = [1, 1]} : vector<8x128xf32> to vector<8x32xf32>
    %157 = vector.extract_strided_slice %152 {offsets = [0, 96], sizes = [8, 32], strides = [1, 1]} : vector<8x128xf32> to vector<8x32xf32>
    %158 = arith.mulf %155, %141 : vector<8x32xf32>
    %159 = arith.mulf %154, %156 : vector<8x32xf32>
    %160 = arith.addf %158, %159 : vector<8x32xf32>
    %161 = math.tanh %160 : vector<8x32xf32>
    %162 = arith.mulf %157, %161 : vector<8x32xf32>
    %c56 = arith.constant 56 : index
    %c0_38 = arith.constant 0 : index
    %163 = vector.load %arg13[%c56, %c0_38] : memref<64x32xf32, #tpu.memory_space<vmem>>, vector<8x32xf32>
    tpu.vector_store %arg13[%c56, %c0_38], %162 {strides = array<i32>} : memref<64x32xf32, #tpu.memory_space<vmem>>, vector<8x32xf32>,
    %c0_39 = arith.constant 0 : index
    %c0_40 = arith.constant 0 : index
    %c0_41 = arith.constant 0 : index
    %164 = vector.load %arg11[%c0_39, %c0_40, %c0_41] : memref<2x8x32xf32, #tpu.memory_space<vmem>>, vector<1x8x32xf32>
    %165 = vector.shape_cast %164 : vector<1x8x32xf32> to vector<8x32xf32>
    %166 = vector.shape_cast %162 : vector<8x32xf32> to vector<1x8x32xf32>
    tpu.vector_store %arg11[%c0_39, %c0_40, %c0_41], %166 {strides = array<i32>} : memref<2x8x32xf32, #tpu.memory_space<vmem>>, vector<1x8x32xf32>,
    %c0_42 = arith.constant 0 : index
    %c0_43 = arith.constant 0 : index
    %c0_44 = arith.constant 0 : index
    %167 = vector.load %arg12[%c0_42, %c0_43, %c0_44] : memref<2x8x32xf32, #tpu.memory_space<vmem>>, vector<1x8x32xf32>
    %168 = vector.shape_cast %167 : vector<1x8x32xf32> to vector<8x32xf32>
    %169 = vector.shape_cast %160 : vector<8x32xf32> to vector<1x8x32xf32>
    tpu.vector_store %arg12[%c0_42, %c0_43, %c0_44], %169 {strides = array<i32>} : memref<2x8x32xf32, #tpu.memory_space<vmem>>, vector<1x8x32xf32>,
    %c0_45 = arith.constant 0 : index
    %c0_46 = arith.constant 0 : index
    %170 = vector.load %arg13[%c0_45, %c0_46] : memref<64x32xf32, #tpu.memory_space<vmem>>, vector<64x32xf32>
    %c1 = arith.constant 1 : index
    %c0_47 = arith.constant 0 : index
    %c0_48 = arith.constant 0 : index
    %171 = vector.load %arg5[%c1, %c0_47, %c0_48] : memref<2x32x128xf32, #tpu.memory_space<vmem>>, vector<1x32x128xf32>
    %172 = vector.shape_cast %171 : vector<1x32x128xf32> to vector<32x128xf32>
    %cst_49 = arith.constant dense<0.000000e+00> : vector<64x128xf32>
    %173 = tpu.matmul %170, %172, %cst_49 {dimension_numbers = #tpu.dot_dimension_numbers<[1], [0], [0], [1], [0, 0, 1, 1], [], []>} : vector<64x32xf32>, vector<32x128xf32>, vector<64x128xf32> -> vector<64x128xf32>
    %c1_50 = arith.constant 1 : index
    %c0_51 = arith.constant 0 : index
    %c0_52 = arith.constant 0 : index
    %174 = vector.load %arg6[%c1_50, %c0_51, %c0_52] : memref<2x1x128xf32, #tpu.memory_space<vmem>>, vector<1x1x128xf32>
    %175 = vector.shape_cast %174 : vector<1x1x128xf32> to vector<1x128xf32>
    %176 = vector.broadcast %175 : vector<1x128xf32> to vector<64x128xf32>
    %177 = arith.addf %173, %176 : vector<64x128xf32>
    %c1_53 = arith.constant 1 : index
    %c0_54 = arith.constant 0 : index
    %c0_55 = arith.constant 0 : index
    %178 = vector.load %arg7[%c1_53, %c0_54, %c0_55] : memref<2x32x128xf32, #tpu.memory_space<vmem>>, vector<1x32x128xf32>
    %179 = vector.shape_cast %178 : vector<1x32x128xf32> to vector<32x128xf32>
    %c1_56 = arith.constant 1 : index
    %c0_57 = arith.constant 0 : index
    %c0_58 = arith.constant 0 : index
    %180 = vector.load %arg1[%c1_56, %c0_57, %c0_58] : memref<2x8x32xf32, #tpu.memory_space<vmem>>, vector<1x8x32xf32>
    %181 = vector.shape_cast %180 : vector<1x8x32xf32> to vector<8x32xf32>
    %c1_59 = arith.constant 1 : index
    %c0_60 = arith.constant 0 : index
    %c0_61 = arith.constant 0 : index
    %182 = vector.load %arg2[%c1_59, %c0_60, %c0_61] : memref<2x8x32xf32, #tpu.memory_space<vmem>>, vector<1x8x32xf32>
    %183 = vector.shape_cast %182 : vector<1x8x32xf32> to vector<8x32xf32>
    %184 = vector.extract_strided_slice %177 {offsets = [0, 0], sizes = [8, 128], strides = [1, 1]} : vector<64x128xf32> to vector<8x128xf32>
    %cst_62 = arith.constant dense<0.000000e+00> : vector<8x128xf32>
    %185 = tpu.matmul %181, %179, %cst_62 {dimension_numbers = #tpu.dot_dimension_numbers<[1], [0], [0], [1], [0, 0, 1, 1], [], []>} : vector<8x32xf32>, vector<32x128xf32>, vector<8x128xf32> -> vector<8x128xf32>
    %186 = arith.addf %184, %185 : vector<8x128xf32>
    %187 = arith.negf %186 : vector<8x128xf32>
    %188 = math.exp %187 : vector<8x128xf32>
    %cst_63 = arith.constant 1.000000e+00 : f32
    %189 = vector.broadcast %cst_63 : f32 to vector<8x128xf32>
    %190 = arith.addf %189, %188 : vector<8x128xf32>
    %191 = arith.divf %189, %190 : vector<8x128xf32>
    %192 = math.tanh %186 : vector<8x128xf32>
    %193 = vector.extract_strided_slice %191 {offsets = [0, 0], sizes = [8, 32], strides = [1, 1]} : vector<8x128xf32> to vector<8x32xf32>
    %194 = vector.extract_strided_slice %191 {offsets = [0, 32], sizes = [8, 32], strides = [1, 1]} : vector<8x128xf32> to vector<8x32xf32>
    %195 = vector.extract_strided_slice %192 {offsets = [0, 64], sizes = [8, 32], strides = [1, 1]} : vector<8x128xf32> to vector<8x32xf32>
    %196 = vector.extract_strided_slice %191 {offsets = [0, 96], sizes = [8, 32], strides = [1, 1]} : vector<8x128xf32> to vector<8x32xf32>
    %197 = arith.mulf %194, %183 : vector<8x32xf32>
    %198 = arith.mulf %193, %195 : vector<8x32xf32>
    %199 = arith.addf %197, %198 : vector<8x32xf32>
    %200 = math.tanh %199 : vector<8x32xf32>
    %201 = arith.mulf %196, %200 : vector<8x32xf32>
    %c0_64 = arith.constant 0 : index
    %c0_65 = arith.constant 0 : index
    %202 = vector.load %arg13[%c0_64, %c0_65] : memref<64x32xf32, #tpu.memory_space<vmem>>, vector<8x32xf32>
    tpu.vector_store %arg13[%c0_64, %c0_65], %201 {strides = array<i32>} : memref<64x32xf32, #tpu.memory_space<vmem>>, vector<8x32xf32>,
    %203 = vector.extract_strided_slice %177 {offsets = [8, 0], sizes = [8, 128], strides = [1, 1]} : vector<64x128xf32> to vector<8x128xf32>
    %cst_66 = arith.constant dense<0.000000e+00> : vector<8x128xf32>
    %204 = tpu.matmul %201, %179, %cst_66 {dimension_numbers = #tpu.dot_dimension_numbers<[1], [0], [0], [1], [0, 0, 1, 1], [], []>} : vector<8x32xf32>, vector<32x128xf32>, vector<8x128xf32> -> vector<8x128xf32>
    %205 = arith.addf %203, %204 : vector<8x128xf32>
    %206 = arith.negf %205 : vector<8x128xf32>
    %207 = math.exp %206 : vector<8x128xf32>
    %cst_67 = arith.constant 1.000000e+00 : f32
    %208 = vector.broadcast %cst_67 : f32 to vector<8x128xf32>
    %209 = arith.addf %208, %207 : vector<8x128xf32>
    %210 = arith.divf %208, %209 : vector<8x128xf32>
    %211 = math.tanh %205 : vector<8x128xf32>
    %212 = vector.extract_strided_slice %210 {offsets = [0, 0], sizes = [8, 32], strides = [1, 1]} : vector<8x128xf32> to vector<8x32xf32>
    %213 = vector.extract_strided_slice %210 {offsets = [0, 32], sizes = [8, 32], strides = [1, 1]} : vector<8x128xf32> to vector<8x32xf32>
    %214 = vector.extract_strided_slice %211 {offsets = [0, 64], sizes = [8, 32], strides = [1, 1]} : vector<8x128xf32> to vector<8x32xf32>
    %215 = vector.extract_strided_slice %210 {offsets = [0, 96], sizes = [8, 32], strides = [1, 1]} : vector<8x128xf32> to vector<8x32xf32>
    %216 = arith.mulf %213, %199 : vector<8x32xf32>
    %217 = arith.mulf %212, %214 : vector<8x32xf32>
    %218 = arith.addf %216, %217 : vector<8x32xf32>
    %219 = math.tanh %218 : vector<8x32xf32>
    %220 = arith.mulf %215, %219 : vector<8x32xf32>
    %c8_68 = arith.constant 8 : index
    %c0_69 = arith.constant 0 : index
    %221 = vector.load %arg13[%c8_68, %c0_69] : memref<64x32xf32, #tpu.memory_space<vmem>>, vector<8x32xf32>
    tpu.vector_store %arg13[%c8_68, %c0_69], %220 {strides = array<i32>} : memref<64x32xf32, #tpu.memory_space<vmem>>, vector<8x32xf32>,
    %222 = vector.extract_strided_slice %177 {offsets = [16, 0], sizes = [8, 128], strides = [1, 1]} : vector<64x128xf32> to vector<8x128xf32>
    %cst_70 = arith.constant dense<0.000000e+00> : vector<8x128xf32>
    %223 = tpu.matmul %220, %179, %cst_70 {dimension_numbers = #tpu.dot_dimension_numbers<[1], [0], [0], [1], [0, 0, 1, 1], [], []>} : vector<8x32xf32>, vector<32x128xf32>, vector<8x128xf32> -> vector<8x128xf32>
    %224 = arith.addf %222, %223 : vector<8x128xf32>
    %225 = arith.negf %224 : vector<8x128xf32>
    %226 = math.exp %225 : vector<8x128xf32>
    %cst_71 = arith.constant 1.000000e+00 : f32
    %227 = vector.broadcast %cst_71 : f32 to vector<8x128xf32>
    %228 = arith.addf %227, %226 : vector<8x128xf32>
    %229 = arith.divf %227, %228 : vector<8x128xf32>
    %230 = math.tanh %224 : vector<8x128xf32>
    %231 = vector.extract_strided_slice %229 {offsets = [0, 0], sizes = [8, 32], strides = [1, 1]} : vector<8x128xf32> to vector<8x32xf32>
    %232 = vector.extract_strided_slice %229 {offsets = [0, 32], sizes = [8, 32], strides = [1, 1]} : vector<8x128xf32> to vector<8x32xf32>
    %233 = vector.extract_strided_slice %230 {offsets = [0, 64], sizes = [8, 32], strides = [1, 1]} : vector<8x128xf32> to vector<8x32xf32>
    %234 = vector.extract_strided_slice %229 {offsets = [0, 96], sizes = [8, 32], strides = [1, 1]} : vector<8x128xf32> to vector<8x32xf32>
    %235 = arith.mulf %232, %218 : vector<8x32xf32>
    %236 = arith.mulf %231, %233 : vector<8x32xf32>
    %237 = arith.addf %235, %236 : vector<8x32xf32>
    %238 = math.tanh %237 : vector<8x32xf32>
    %239 = arith.mulf %234, %238 : vector<8x32xf32>
    %c16_72 = arith.constant 16 : index
    %c0_73 = arith.constant 0 : index
    %240 = vector.load %arg13[%c16_72, %c0_73] : memref<64x32xf32, #tpu.memory_space<vmem>>, vector<8x32xf32>
    tpu.vector_store %arg13[%c16_72, %c0_73], %239 {strides = array<i32>} : memref<64x32xf32, #tpu.memory_space<vmem>>, vector<8x32xf32>,
    %241 = vector.extract_strided_slice %177 {offsets = [24, 0], sizes = [8, 128], strides = [1, 1]} : vector<64x128xf32> to vector<8x128xf32>
    %cst_74 = arith.constant dense<0.000000e+00> : vector<8x128xf32>
    %242 = tpu.matmul %239, %179, %cst_74 {dimension_numbers = #tpu.dot_dimension_numbers<[1], [0], [0], [1], [0, 0, 1, 1], [], []>} : vector<8x32xf32>, vector<32x128xf32>, vector<8x128xf32> -> vector<8x128xf32>
    %243 = arith.addf %241, %242 : vector<8x128xf32>
    %244 = arith.negf %243 : vector<8x128xf32>
    %245 = math.exp %244 : vector<8x128xf32>
    %cst_75 = arith.constant 1.000000e+00 : f32
    %246 = vector.broadcast %cst_75 : f32 to vector<8x128xf32>
    %247 = arith.addf %246, %245 : vector<8x128xf32>
    %248 = arith.divf %246, %247 : vector<8x128xf32>
    %249 = math.tanh %243 : vector<8x128xf32>
    %250 = vector.extract_strided_slice %248 {offsets = [0, 0], sizes = [8, 32], strides = [1, 1]} : vector<8x128xf32> to vector<8x32xf32>
    %251 = vector.extract_strided_slice %248 {offsets = [0, 32], sizes = [8, 32], strides = [1, 1]} : vector<8x128xf32> to vector<8x32xf32>
    %252 = vector.extract_strided_slice %249 {offsets = [0, 64], sizes = [8, 32], strides = [1, 1]} : vector<8x128xf32> to vector<8x32xf32>
    %253 = vector.extract_strided_slice %248 {offsets = [0, 96], sizes = [8, 32], strides = [1, 1]} : vector<8x128xf32> to vector<8x32xf32>
    %254 = arith.mulf %251, %237 : vector<8x32xf32>
    %255 = arith.mulf %250, %252 : vector<8x32xf32>
    %256 = arith.addf %254, %255 : vector<8x32xf32>
    %257 = math.tanh %256 : vector<8x32xf32>
    %258 = arith.mulf %253, %257 : vector<8x32xf32>
    %c24_76 = arith.constant 24 : index
    %c0_77 = arith.constant 0 : index
    %259 = vector.load %arg13[%c24_76, %c0_77] : memref<64x32xf32, #tpu.memory_space<vmem>>, vector<8x32xf32>
    tpu.vector_store %arg13[%c24_76, %c0_77], %258 {strides = array<i32>} : memref<64x32xf32, #tpu.memory_space<vmem>>, vector<8x32xf32>,
    %260 = vector.extract_strided_slice %177 {offsets = [32, 0], sizes = [8, 128], strides = [1, 1]} : vector<64x128xf32> to vector<8x128xf32>
    %cst_78 = arith.constant dense<0.000000e+00> : vector<8x128xf32>
    %261 = tpu.matmul %258, %179, %cst_78 {dimension_numbers = #tpu.dot_dimension_numbers<[1], [0], [0], [1], [0, 0, 1, 1], [], []>} : vector<8x32xf32>, vector<32x128xf32>, vector<8x128xf32> -> vector<8x128xf32>
    %262 = arith.addf %260, %261 : vector<8x128xf32>
    %263 = arith.negf %262 : vector<8x128xf32>
    %264 = math.exp %263 : vector<8x128xf32>
    %cst_79 = arith.constant 1.000000e+00 : f32
    %265 = vector.broadcast %cst_79 : f32 to vector<8x128xf32>
    %266 = arith.addf %265, %264 : vector<8x128xf32>
    %267 = arith.divf %265, %266 : vector<8x128xf32>
    %268 = math.tanh %262 : vector<8x128xf32>
    %269 = vector.extract_strided_slice %267 {offsets = [0, 0], sizes = [8, 32], strides = [1, 1]} : vector<8x128xf32> to vector<8x32xf32>
    %270 = vector.extract_strided_slice %267 {offsets = [0, 32], sizes = [8, 32], strides = [1, 1]} : vector<8x128xf32> to vector<8x32xf32>
    %271 = vector.extract_strided_slice %268 {offsets = [0, 64], sizes = [8, 32], strides = [1, 1]} : vector<8x128xf32> to vector<8x32xf32>
    %272 = vector.extract_strided_slice %267 {offsets = [0, 96], sizes = [8, 32], strides = [1, 1]} : vector<8x128xf32> to vector<8x32xf32>
    %273 = arith.mulf %270, %256 : vector<8x32xf32>
    %274 = arith.mulf %269, %271 : vector<8x32xf32>
    %275 = arith.addf %273, %274 : vector<8x32xf32>
    %276 = math.tanh %275 : vector<8x32xf32>
    %277 = arith.mulf %272, %276 : vector<8x32xf32>
    %c32_80 = arith.constant 32 : index
    %c0_81 = arith.constant 0 : index
    %278 = vector.load %arg13[%c32_80, %c0_81] : memref<64x32xf32, #tpu.memory_space<vmem>>, vector<8x32xf32>
    tpu.vector_store %arg13[%c32_80, %c0_81], %277 {strides = array<i32>} : memref<64x32xf32, #tpu.memory_space<vmem>>, vector<8x32xf32>,
    %279 = vector.extract_strided_slice %177 {offsets = [40, 0], sizes = [8, 128], strides = [1, 1]} : vector<64x128xf32> to vector<8x128xf32>
    %cst_82 = arith.constant dense<0.000000e+00> : vector<8x128xf32>
    %280 = tpu.matmul %277, %179, %cst_82 {dimension_numbers = #tpu.dot_dimension_numbers<[1], [0], [0], [1], [0, 0, 1, 1], [], []>} : vector<8x32xf32>, vector<32x128xf32>, vector<8x128xf32> -> vector<8x128xf32>
    %281 = arith.addf %279, %280 : vector<8x128xf32>
    %282 = arith.negf %281 : vector<8x128xf32>
    %283 = math.exp %282 : vector<8x128xf32>
    %cst_83 = arith.constant 1.000000e+00 : f32
    %284 = vector.broadcast %cst_83 : f32 to vector<8x128xf32>
    %285 = arith.addf %284, %283 : vector<8x128xf32>
    %286 = arith.divf %284, %285 : vector<8x128xf32>
    %287 = math.tanh %281 : vector<8x128xf32>
    %288 = vector.extract_strided_slice %286 {offsets = [0, 0], sizes = [8, 32], strides = [1, 1]} : vector<8x128xf32> to vector<8x32xf32>
    %289 = vector.extract_strided_slice %286 {offsets = [0, 32], sizes = [8, 32], strides = [1, 1]} : vector<8x128xf32> to vector<8x32xf32>
    %290 = vector.extract_strided_slice %287 {offsets = [0, 64], sizes = [8, 32], strides = [1, 1]} : vector<8x128xf32> to vector<8x32xf32>
    %291 = vector.extract_strided_slice %286 {offsets = [0, 96], sizes = [8, 32], strides = [1, 1]} : vector<8x128xf32> to vector<8x32xf32>
    %292 = arith.mulf %289, %275 : vector<8x32xf32>
    %293 = arith.mulf %288, %290 : vector<8x32xf32>
    %294 = arith.addf %292, %293 : vector<8x32xf32>
    %295 = math.tanh %294 : vector<8x32xf32>
    %296 = arith.mulf %291, %295 : vector<8x32xf32>
    %c40_84 = arith.constant 40 : index
    %c0_85 = arith.constant 0 : index
    %297 = vector.load %arg13[%c40_84, %c0_85] : memref<64x32xf32, #tpu.memory_space<vmem>>, vector<8x32xf32>
    tpu.vector_store %arg13[%c40_84, %c0_85], %296 {strides = array<i32>} : memref<64x32xf32, #tpu.memory_space<vmem>>, vector<8x32xf32>,
    %298 = vector.extract_strided_slice %177 {offsets = [48, 0], sizes = [8, 128], strides = [1, 1]} : vector<64x128xf32> to vector<8x128xf32>
    %cst_86 = arith.constant dense<0.000000e+00> : vector<8x128xf32>
    %299 = tpu.matmul %296, %179, %cst_86 {dimension_numbers = #tpu.dot_dimension_numbers<[1], [0], [0], [1], [0, 0, 1, 1], [], []>} : vector<8x32xf32>, vector<32x128xf32>, vector<8x128xf32> -> vector<8x128xf32>
    %300 = arith.addf %298, %299 : vector<8x128xf32>
    %301 = arith.negf %300 : vector<8x128xf32>
    %302 = math.exp %301 : vector<8x128xf32>
    %cst_87 = arith.constant 1.000000e+00 : f32
    %303 = vector.broadcast %cst_87 : f32 to vector<8x128xf32>
    %304 = arith.addf %303, %302 : vector<8x128xf32>
    %305 = arith.divf %303, %304 : vector<8x128xf32>
    %306 = math.tanh %300 : vector<8x128xf32>
    %307 = vector.extract_strided_slice %305 {offsets = [0, 0], sizes = [8, 32], strides = [1, 1]} : vector<8x128xf32> to vector<8x32xf32>
    %308 = vector.extract_strided_slice %305 {offsets = [0, 32], sizes = [8, 32], strides = [1, 1]} : vector<8x128xf32> to vector<8x32xf32>
    %309 = vector.extract_strided_slice %306 {offsets = [0, 64], sizes = [8, 32], strides = [1, 1]} : vector<8x128xf32> to vector<8x32xf32>
    %310 = vector.extract_strided_slice %305 {offsets = [0, 96], sizes = [8, 32], strides = [1, 1]} : vector<8x128xf32> to vector<8x32xf32>
    %311 = arith.mulf %308, %294 : vector<8x32xf32>
    %312 = arith.mulf %307, %309 : vector<8x32xf32>
    %313 = arith.addf %311, %312 : vector<8x32xf32>
    %314 = math.tanh %313 : vector<8x32xf32>
    %315 = arith.mulf %310, %314 : vector<8x32xf32>
    %c48_88 = arith.constant 48 : index
    %c0_89 = arith.constant 0 : index
    %316 = vector.load %arg13[%c48_88, %c0_89] : memref<64x32xf32, #tpu.memory_space<vmem>>, vector<8x32xf32>
    tpu.vector_store %arg13[%c48_88, %c0_89], %315 {strides = array<i32>} : memref<64x32xf32, #tpu.memory_space<vmem>>, vector<8x32xf32>,
    %317 = vector.extract_strided_slice %177 {offsets = [56, 0], sizes = [8, 128], strides = [1, 1]} : vector<64x128xf32> to vector<8x128xf32>
    %cst_90 = arith.constant dense<0.000000e+00> : vector<8x128xf32>
    %318 = tpu.matmul %315, %179, %cst_90 {dimension_numbers = #tpu.dot_dimension_numbers<[1], [0], [0], [1], [0, 0, 1, 1], [], []>} : vector<8x32xf32>, vector<32x128xf32>, vector<8x128xf32> -> vector<8x128xf32>
    %319 = arith.addf %317, %318 : vector<8x128xf32>
    %320 = arith.negf %319 : vector<8x128xf32>
    %321 = math.exp %320 : vector<8x128xf32>
    %cst_91 = arith.constant 1.000000e+00 : f32
    %322 = vector.broadcast %cst_91 : f32 to vector<8x128xf32>
    %323 = arith.addf %322, %321 : vector<8x128xf32>
    %324 = arith.divf %322, %323 : vector<8x128xf32>
    %325 = math.tanh %319 : vector<8x128xf32>
    %326 = vector.extract_strided_slice %324 {offsets = [0, 0], sizes = [8, 32], strides = [1, 1]} : vector<8x128xf32> to vector<8x32xf32>
    %327 = vector.extract_strided_slice %324 {offsets = [0, 32], sizes = [8, 32], strides = [1, 1]} : vector<8x128xf32> to vector<8x32xf32>
    %328 = vector.extract_strided_slice %325 {offsets = [0, 64], sizes = [8, 32], strides = [1, 1]} : vector<8x128xf32> to vector<8x32xf32>
    %329 = vector.extract_strided_slice %324 {offsets = [0, 96], sizes = [8, 32], strides = [1, 1]} : vector<8x128xf32> to vector<8x32xf32>
    %330 = arith.mulf %327, %313 : vector<8x32xf32>
    %331 = arith.mulf %326, %328 : vector<8x32xf32>
    %332 = arith.addf %330, %331 : vector<8x32xf32>
    %333 = math.tanh %332 : vector<8x32xf32>
    %334 = arith.mulf %329, %333 : vector<8x32xf32>
    %c56_92 = arith.constant 56 : index
    %c0_93 = arith.constant 0 : index
    %335 = vector.load %arg13[%c56_92, %c0_93] : memref<64x32xf32, #tpu.memory_space<vmem>>, vector<8x32xf32>
    tpu.vector_store %arg13[%c56_92, %c0_93], %334 {strides = array<i32>} : memref<64x32xf32, #tpu.memory_space<vmem>>, vector<8x32xf32>,
    %c1_94 = arith.constant 1 : index
    %c0_95 = arith.constant 0 : index
    %c0_96 = arith.constant 0 : index
    %336 = vector.load %arg11[%c1_94, %c0_95, %c0_96] : memref<2x8x32xf32, #tpu.memory_space<vmem>>, vector<1x8x32xf32>
    %337 = vector.shape_cast %336 : vector<1x8x32xf32> to vector<8x32xf32>
    %338 = vector.shape_cast %334 : vector<8x32xf32> to vector<1x8x32xf32>
    tpu.vector_store %arg11[%c1_94, %c0_95, %c0_96], %338 {strides = array<i32>} : memref<2x8x32xf32, #tpu.memory_space<vmem>>, vector<1x8x32xf32>,
    %c1_97 = arith.constant 1 : index
    %c0_98 = arith.constant 0 : index
    %c0_99 = arith.constant 0 : index
    %339 = vector.load %arg12[%c1_97, %c0_98, %c0_99] : memref<2x8x32xf32, #tpu.memory_space<vmem>>, vector<1x8x32xf32>
    %340 = vector.shape_cast %339 : vector<1x8x32xf32> to vector<8x32xf32>
    %341 = vector.shape_cast %332 : vector<8x32xf32> to vector<1x8x32xf32>
    tpu.vector_store %arg12[%c1_97, %c0_98, %c0_99], %341 {strides = array<i32>} : memref<2x8x32xf32, #tpu.memory_space<vmem>>, vector<1x8x32xf32>,
    %c0_100 = arith.constant 0 : index
    %c0_101 = arith.constant 0 : index
    %342 = vector.load %arg13[%c0_100, %c0_101] : memref<64x32xf32, #tpu.memory_space<vmem>>, vector<64x32xf32>
    %c0_102 = arith.constant 0 : index
    %c0_103 = arith.constant 0 : index
    %343 = vector.load %arg8[%c0_102, %c0_103] : memref<32x4xf32, #tpu.memory_space<vmem>>, vector<32x4xf32>
    %cst_104 = arith.constant dense<0.000000e+00> : vector<64x4xf32>
    %344 = tpu.matmul %342, %343, %cst_104 {dimension_numbers = #tpu.dot_dimension_numbers<[1], [0], [0], [1], [0, 0, 1, 1], [], []>} : vector<64x32xf32>, vector<32x4xf32>, vector<64x4xf32> -> vector<64x4xf32>
    %c0_105 = arith.constant 0 : index
    %c0_106 = arith.constant 0 : index
    %345 = vector.load %arg9[%c0_105, %c0_106] : memref<1x4xf32, #tpu.memory_space<vmem>>, vector<1x4xf32>
    %346 = vector.broadcast %345 : vector<1x4xf32> to vector<64x4xf32>
    %347 = arith.addf %344, %346 : vector<64x4xf32>
    %348 = arith.negf %347 : vector<64x4xf32>
    %349 = math.exp %348 : vector<64x4xf32>
    %cst_107 = arith.constant 1.000000e+00 : f32
    %350 = vector.broadcast %cst_107 : f32 to vector<64x4xf32>
    %351 = arith.addf %350, %349 : vector<64x4xf32>
    %352 = arith.divf %350, %351 : vector<64x4xf32>
    %c0_108 = arith.constant 0 : index
    %c0_109 = arith.constant 0 : index
    %353 = vector.load %arg10[%c0_108, %c0_109] : memref<64x4xf32, #tpu.memory_space<vmem>>, vector<64x4xf32>
    tpu.vector_store %arg10[%c0_108, %c0_109], %352 {strides = array<i32>} : memref<64x4xf32, #tpu.memory_space<vmem>>, vector<64x4xf32>,
    return
  }
}

</mosaic_0001>

<bundles_post_ra>
// kernel: tpu_custom_call.1
= control target key start
LH: loop header
LB: loop body
LE: loop exit
PB: predicated region body
PF: predicated region fallthrough
CT: control target
= control target key end

     0   :  { %18 = vsyncpa [#allocation4], 0  ;;  %s3495_s0 = inlined_call_operand.vmem [shape: f32[64,4], index: 0, kind: input, shape index: {}]   ;;  %s3496_s1 = inlined_call_operand.vmem [shape: f32[2,8,32], index: 1, kind: input, shape index: {}]   ;;  %s3497_s2 = inlined_call_operand.vmem [shape: f32[2,8,32], index: 2, kind: input, shape index: {}]   ;;  %s3498_s3 = inlined_call_operand.vmem [shape: f32[4,128], index: 3, kind: input, shape index: {}]   ;;  %s3499_s4 = inlined_call_operand.vmem [shape: f32[1,128], index: 4, kind: input, shape index: {}]   ;;  %s3500_s5 = inlined_call_operand.vmem [shape: f32[2,32,128], index: 5, kind: input, shape index: {}]   ;;  %s3501_s6 = inlined_call_operand.vmem [shape: f32[2,1,128], index: 6, kind: input, shape index: {}]   ;;  %s3502_s7 = inlined_call_operand.hbm [shape: f32[2,32,128], index: 7, kind: input, shape index: {}]   ;;  %s3503_s8 = inlined_call_operand.vmem [shape: f32[32,4], index: 8, kind: input, shape index: {}]   ;;  %s3504_s9 = inlined_call_operand.vmem [shape: f32[1,4], index: 9, kind: input, shape index: {}]   ;;  %s3505_s10 = inlined_call_operand.vmem [shape: f32[64,4], index: 10, kind: output, shape index: {0}]   ;;  %s3506_s11 = inlined_call_operand.hbm [shape: f32[2,8,32], index: 11, kind: output, shape index: {1}]   ;;  %s3507_s12 = inlined_call_operand.hbm [shape: f32[2,8,32], index: 12, kind: output, shape index: {2}]  }
   0x1   :  { %19 = vsyncpa [#allocation5], 0 }
   0x2   :  { %20 = vsyncpa [#allocation8], 0  ;;  %s2923_s21 = smov [#allocation3]  }
   0x3   :  { %s40_s22 = sshll.u32 %s2923_s21, 4  ;;  %s41_s22 = int_to_ptr.vmem [resolvable:$true] %s40_s22 }
   0x4   :  { %s2865_s23 = scalar_lea.vmem %s41_s22, 1024  ;;  %p2870_p1 = scmp.lt.s32.totalorder %s41_s22, %s41_s22 }
   0x5   :  { %p2866_p0 = scmp.ne.s32.totalorder %s41_s22, %s2865_s23  ;;  %p2871_p2 = scmp.lt.s32.totalorder %s2865_s23, %s2865_s23 }
   0x7   :  { %p2872_p3 = por %p2871_p2, %p2870_p1 }
   0x9   :  { %p2873_p4 = pnand %p2872_p3, %p2866_p0 }
   0xb   :  { %2876 = shalt.err (!%p2873_p4)
}
   0xc   :  { %s2924_s24 = smov 128   ;;  %s2925_s25 = smov 8  }
   0xd   :  { %46 = dma.hbm_to_vmem [thread:$0]  %s3502_s7, 1024, %s41_s22, [#allocation4], %s2924_s24, %s2924_s24, %s2925_s25  }
   0xe   :  { %2917 = dma.done.wait [#allocation4], 1024  }
   0xf   :  { %2918 = vsyncadd [#allocation4], 4294966272  ;;  %vm95_vm0 = vcmask 1043456   ;;  %vm70_vm1 = vcmask 31744   ;;  %v62_v0 = vld [vmem:[%s3498_s3] sm:$0xf] }
  0x10   :  { %v58_v1 = vld [vmem:[%s3495_s0 + $0x20] sm:$0xff]  ;;  %v59_v2 = vld [vmem:[%s3495_s0 + $0x28] sm:$0xff]  ;;  %2685 = vmatprep.subr.msk.mxu1 %vm95_vm0, %v62_v0  ;;  %v3015_v3 = vld [vmem:[#allocation3 + $0x18] sm:$0xff]  ;;  %2455 = vmatprep.subr.msk.mxu0 %vm95_vm0, %v62_v0  ;;  %v2926_v5 = vmov 0.0   ;;  %vm2927_vm2 = vmmov 0   ;;  %vm210_vm3 = vcmask 261120  }
  0x11   :  { %2463 = vmatprep.mubr.msk.f32.mxu1 %vm70_vm1, %v58_v1  ;;  %2686 = vmatpush3.msk.msra.mxu1 %vm95_vm0, %v62_v0  ;;  %v54_v4 = vld [vmem:[%s3495_s0] sm:$0xff]  ;;  %v55_v6 = vld [vmem:[%s3495_s0 + $0x8] sm:$0xff]  ;;  %v60_v7 = vld [vmem:[%s3495_s0 + $0x30] sm:$0xff]  ;;  %s2928_s28 = smov 64   ;;  %s2929_s13 = smov 32  }
  0x12   :  { %2464 = vmatmul.mubr.msk.f32.vlgmr.msra.gmra.mxu1 %vm70_vm1, %v59_v2  ;;  %2469 = vmatprep.subr.mxu1 %v2926_v5  ;;  %v3032_v8 = vld [vmem:[#allocation3 + $0x10] sm:$0xff]  ;;  %v61_v9 = vld [vmem:[%s3495_s0 + $0x38] sm:$0xff]  ;;  %v3041_v10 = vld [vmem:[#allocation3 + $0x8] sm:$0xff] }
  0x13   :  { %2470 = vmatpush3.msra.mxu1 %v3015_v3  ;;  %2456 = vmatpush3.msk.msra.mxu0 %vm95_vm0, %v62_v0  ;;  %v3047_v11 = vld [vmem:[#allocation3] sm:$0xff]  ;;  %v56_v54 = vld [vmem:[%s3495_s0 + $0x10] sm:$0xff]  ;;  %v57_v55 = vld [vmem:[%s3495_s0 + $0x18] sm:$0xff] }
  0x14   :  { %2457 = vmatprep.mubr.msk.f32.mxu0 %vm70_vm1, %v54_v4  ;;  %2471 = vmatprep.subr.mxu1 %v2926_v5  ;;  %v208_v12 = vld [vmem:[%s3496_s1] sm:$0xff] }
  0x15   :  { %2458 = vmatmul.mubr.msk.f32.vlgmr.msra.gmra.mxu0 %vm70_vm1, %v55_v6  ;;  %2466 = vmatprep.mubr.msk.f32.mxu1 %vm70_vm1, %v60_v7  ;;  %v3086_v18 = vld [vmem:[%s3499_s4] ss:$0 sm:$0xff] }
  0x16   :  { %2472 = vmatpush3.msra.mxu1 %v3032_v8  ;;  %2491 = vmatprep.subr.mxu0 %v2926_v5  ;;  %v209_v25 = vld [vmem:[%s3497_s2] sm:$0xff] }
  0x17   :  { %2467 = vmatmul.mubr.msk.f32.gmra.mxu1 %vm70_vm1, %v61_v9  ;;  %2473 = vmatprep.subr.mxu1 %v2926_v5 }
  0x18   :  { %2474 = vmatpush3.msra.mxu1 %v3041_v10  ;;  %2477 = vmatprep.mubr.msk.f32.mxu1 %vm2927_vm2, %v2926_v5 }
  0x19   :  { %2475 = vmatprep.subr.mxu1 %v2926_v5  ;;  %2492 = vmatpush3.msra.mxu0 %v3015_v3 }
  0x1a   :  { %2476 = vmatpush3.msra.mxu1 %v3047_v11  ;;  %2493 = vmatprep.subr.mxu0 %v2926_v5 }
  0x1b   :  { %2478 = vmatmul.mubr.msk.f32.vlgmr.msra.gmra.mxu1 %vm210_vm3, %v208_v12  ;;  %2480 = vmatprep.subr.mxu1 %v2926_v5 }
  0x1c   :  { %2481 = vmatpush3.msra.mxu1 %v3015_v3  ;;  %2488 = vmatprep.mubr.msk.f32.mxu1 %vm2927_vm2, %v2926_v5 }
  0x1d   :  { %2482 = vmatprep.subr.mxu1 %v2926_v5  ;;  %2494 = vmatpush3.msra.mxu0 %v3032_v8 }
  0x1e   :  { %2483 = vmatpush3.msra.mxu1 %v3032_v8  ;;  %2495 = vmatprep.subr.mxu0 %v2926_v5 }
  0x1f   :  { %2484 = vmatprep.subr.mxu1 %v2926_v5  ;;  %2496 = vmatpush3.msra.mxu0 %v3041_v10 }
  0x20   :  { %2485 = vmatpush3.msra.mxu1 %v3041_v10  ;;  %2497 = vmatprep.subr.mxu0 %v2926_v5 }
  0x21   :  { %2486 = vmatprep.subr.mxu1 %v2926_v5  ;;  %2498 = vmatpush3.msra.mxu0 %v3047_v11 }
  0x22   :  { %2487 = vmatpush3.msra.mxu1 %v3047_v11  ;;  %2513 = vmatprep.subr.mxu0 %v2926_v5 }
  0x23   :  { %2502 = vmatprep.subr.mxu1 %v2926_v5  ;;  %2460 = vmatprep.mubr.msk.f32.mxu0 %vm70_vm1, %v56_v54 }
  0x24   :  { %2461 = vmatmul.mubr.msk.f32.gmra.mxu0 %vm70_vm1, %v57_v55 }
  0x25   :  { %2499 = vmatprep.mubr.msk.f32.mxu0 %vm2927_vm2, %v2926_v5 }
  0xd2   :  { %v3077_v13 = vpop.f32.mrf.mxu1 }
  0xd4   :  { %v3079_v14 = vpop.f32.mrf.mxu1 }
  0xd5   :  { %v2459_v15 = vpop.f32.mrf.mxu0 }
  0xd6   :  { %v171_v40 = vadd.f32 %v2459_v15, %v3086_v18 }
  0xd7   :  { %v3081_v16 = vpop.f32.mrf.mxu1  ;;  %v165_v17 = vpop.f32.mrf.mxu0 }
  0xd8   :  { %v166_v20 = vadd.f32 %v3086_v18, %v165_v17 }
  0xd9   :  { %v3088_v19 = vpop.f32.mrf.mxu1 }
  0xdb   :  { %v280_v21 = vpop.f32.mrf.mxu1 }
  0xdc   :  { %v284_v22 = vadd.f32 %v280_v21, %v166_v20 }
  0xdd   :  { %v2479_v23 = vpop.f32.mrf.mxu1 }
  0xde   :  { %2697 = vtanh.f32 %v284_v22  ;;  %v2278_v26 = vmul.f32 -1.442695, %v284_v22 }
  0xe0   :  { %2699 = vpow2.f32 %v2278_v26 }
  0xe4   :  { %v2462_v60 = vpop.f32.mrf.mxu0 }
  0xe5   :  { %v181_v26 = vadd.f32 %v2462_v60, %v3086_v18 }
  0xe6   :  { %v175_v61 = vpop.f32.mrf.mxu0 }
  0xe7   :  { %v176_v62 = vadd.f32 %v3086_v18, %v175_v61 }
  0xeb   :  { %v2698_v24 = vpop.eup %2697 }
  0xec   :  { %298 = vrot.lane.b32.xlu0 %v2698_v24, %s2928_s28 }
  0xed   :  { %v2700_v27 = vpop.eup %2699 }
  0xee   :  { %v288_v28 = vadd.f32 1.0, %v2700_v27 }
  0xf0   :  { %293 = vrot.lane.b32.xlu0 %v209_v25, %s2929_s13  ;;  %2701 = vrcp.f32 %v288_v28 }
  0xfd   :  { %v2702_v29 = vpop.eup %2701 }
 0x15e   :  { %v299_v30 = vpop.permute.xlu0 %298 }
 0x15f   :  { %v301_v31 = vmul.f32 %v2702_v29, %v299_v30 }
 0x161   :  { %303 = vrot.lane.b32.xlu1 %v301_v31, %s2929_s13 }
 0x162   :  { %v294_v32 = vpop.permute.xlu0 %293 }
 0x163   :  { %v296_v33 = vmul.f32 %v2702_v29, %v294_v32 }
 0x1d3   :  { %v304_v34 = vpop.permute.xlu1 %303 }
 0x1d4   :  { %v306_v35 = vadd.f32 %v304_v34, %v296_v33 }
 0x1d6   :  { %2703 = vtanh.f32 %v306_v35 }
 0x1e3   :  { %v2704_v36 = vpop.eup %2703 }
 0x1e4   :  { %309 = vrot.lane.b32.xlu1 %v2704_v36, %s2928_s28 }
 0x256   :  { %v310_v37 = vpop.permute.xlu1 %309 }
 0x257   :  { %v312_v38 = vmul.f32 %v2702_v29, %v310_v37 }
 0x259   :  { %314 = vrot.lane.b32.xlu0 %v312_v38, %s2929_s13 }
 0x2cb   :  { %v315_v39 = vpop.permute.xlu0 %314 }
 0x2cc   :  { %317 = vst.msk [vmem:[#allocation2] sm:$0xff] %vm210_vm3, %v315_v39  ;;  %2489 = vmatmul.mubr.msk.f32.vlgmr.msra.gmra.mxu1 %vm210_vm3, %v315_v39 }
 0x2cd   :  { %2503 = vmatpush3.msra.mxu1 %v3015_v3  ;;  %2510 = vmatprep.mubr.msk.f32.mxu1 %vm2927_vm2, %v2926_v5 }
 0x2ce   :  { %2504 = vmatprep.subr.mxu1 %v2926_v5 }
 0x2cf   :  { %2505 = vmatpush3.msra.mxu1 %v3032_v8 }
 0x2d0   :  { %2506 = vmatprep.subr.mxu1 %v2926_v5 }
 0x2d1   :  { %2507 = vmatpush3.msra.mxu1 %v3041_v10 }
 0x2d2   :  { %2508 = vmatprep.subr.mxu1 %v2926_v5 }
 0x2d3   :  { %2509 = vmatpush3.msra.mxu1 %v3047_v11 }
 0x2d4   :  { %2524 = vmatprep.subr.mxu1 %v2926_v5 }
 0x38c   :  { %v386_v41 = vpop.f32.mrf.mxu1 }
 0x38d   :  { %v390_v42 = vadd.f32 %v386_v41, %v171_v40 }
 0x38e   :  { %v2490_v43 = vpop.f32.mrf.mxu1 }
 0x38f   :  { %2705 = vtanh.f32 %v390_v42  ;;  %v2280_v45 = vmul.f32 -1.442695, %v390_v42 }
 0x391   :  { %2707 = vpow2.f32 %v2280_v45 }
 0x39c   :  { %v2706_v44 = vpop.eup %2705 }
 0x39d   :  { %400 = vrot.lane.b32.xlu1 %v2706_v44, %s2928_s28  ;;  %v186_v44 = vadd.f32 %v3086_v18, %v3079_v14 }
 0x39e   :  { %v2708_v46 = vpop.eup %2707 }
 0x39f   :  { %v394_v47 = vadd.f32 1.0, %v2708_v46 }
 0x3a1   :  { %2709 = vrcp.f32 %v394_v47 }
 0x3ae   :  { %v2710_v48 = vpop.eup %2709 }
 0x3af   :  { %v398_v51 = vmul.f32 %v2710_v48, %v306_v35 }
 0x40f   :  { %v401_v49 = vpop.permute.xlu1 %400 }
 0x410   :  { %v403_v50 = vmul.f32 %v2710_v48, %v401_v49 }
 0x412   :  { %405 = vrot.lane.b32.xlu0 %v403_v50, %s2929_s13 }
 0x484   :  { %v406_v52 = vpop.permute.xlu0 %405 }
 0x485   :  { %v408_v53 = vadd.f32 %v406_v52, %v398_v51 }
 0x487   :  { %2711 = vtanh.f32 %v408_v53 }
 0x494   :  { %v2712_v56 = vpop.eup %2711 }
 0x495   :  { %411 = vrot.lane.b32.xlu1 %v2712_v56, %s2928_s28 }
 0x507   :  { %v412_v57 = vpop.permute.xlu1 %411 }
 0x508   :  { %v414_v58 = vmul.f32 %v2710_v48, %v412_v57 }
 0x50a   :  { %416 = vrot.lane.b32.xlu0 %v414_v58, %s2929_s13 }
 0x57c   :  { %v417_v59 = vpop.permute.xlu0 %416 }
 0x57d   :  { %419 = vst.msk [vmem:[#allocation2 + $0x8] sm:$0xff] %vm210_vm3, %v417_v59  ;;  %2500 = vmatmul.mubr.msk.f32.vlgmr.msra.gmra.mxu0 %vm210_vm3, %v417_v59 }
 0x57e   :  { %2514 = vmatpush3.msra.mxu0 %v3015_v3  ;;  %2521 = vmatprep.mubr.msk.f32.mxu0 %vm2927_vm2, %v2926_v5 }
 0x57f   :  { %2515 = vmatprep.subr.mxu0 %v2926_v5 }
 0x580   :  { %2516 = vmatpush3.msra.mxu0 %v3032_v8 }
 0x581   :  { %2517 = vmatprep.subr.mxu0 %v2926_v5 }
 0x582   :  { %2518 = vmatpush3.msra.mxu0 %v3041_v10 }
 0x583   :  { %2519 = vmatprep.subr.mxu0 %v2926_v5 }
 0x584   :  { %2520 = vmatpush3.msra.mxu0 %v3047_v11 }
 0x585   :  { %2535 = vmatprep.subr.mxu0 %v2926_v5 }
 0x63d   :  { %v488_v63 = vpop.f32.mrf.mxu0 }
 0x63e   :  { %v492_v0 = vadd.f32 %v488_v63, %v176_v62 }
 0x63f   :  { %v2501_v1 = vpop.f32.mrf.mxu0 }
 0x640   :  { %2713 = vtanh.f32 %v492_v0  ;;  %v2282_v4 = vmul.f32 -1.442695, %v492_v0 }
 0x642   :  { %2715 = vpow2.f32 %v2282_v4 }
 0x64d   :  { %v2714_v2 = vpop.eup %2713 }
 0x64e   :  { %502 = vrot.lane.b32.xlu1 %v2714_v2, %s2928_s28 }
 0x64f   :  { %v2716_v6 = vpop.eup %2715 }
 0x650   :  { %v496_v7 = vadd.f32 1.0, %v2716_v6 }
 0x652   :  { %2717 = vrcp.f32 %v496_v7 }
 0x65f   :  { %v2718_v9 = vpop.eup %2717 }
 0x660   :  { %v500_v17 = vmul.f32 %v2718_v9, %v408_v53 }
 0x6c0   :  { %v503_v12 = vpop.permute.xlu1 %502 }
 0x6c1   :  { %v505_v15 = vmul.f32 %v2718_v9, %v503_v12 }
 0x6c3   :  { %507 = vrot.lane.b32.xlu0 %v505_v15, %s2929_s13 }
 0x735   :  { %v508_v20 = vpop.permute.xlu0 %507 }
 0x736   :  { %v510_v21 = vadd.f32 %v508_v20, %v500_v17 }
 0x738   :  { %2719 = vtanh.f32 %v510_v21 }
 0x745   :  { %v2720_v22 = vpop.eup %2719 }
 0x746   :  { %513 = vrot.lane.b32.xlu1 %v2720_v22, %s2928_s28  ;;  %v1038_v22 = vld [vmem:[#allocation2] sm:$0xff] }
 0x7b8   :  { %v514_v23 = vpop.permute.xlu1 %513 }
 0x7b9   :  { %v516_v24 = vmul.f32 %v2718_v9, %v514_v23  ;;  %v2296_v9 = vld [vmem:[%s3500_s5 + $0x38] sm:$0xff]  ;;  %v2294_v23 = vld [vmem:[%s3500_s5 + $0x28] sm:$0xff] }
 0x7bb   :  { %518 = vrot.lane.b32.xlu0 %v516_v24, %s2929_s13  ;;  %v2293_v24 = vld [vmem:[%s3500_s5 + $0x20] sm:$0xff] }
 0x82d   :  { %v519_v25 = vpop.permute.xlu0 %518 }
 0x82e   :  { %521 = vst.msk [vmem:[#allocation2 + $0x10] sm:$0xff] %vm210_vm3, %v519_v25  ;;  %2511 = vmatmul.mubr.msk.f32.vlgmr.msra.gmra.mxu1 %vm210_vm3, %v519_v25  ;;  %v1039_v25 = vld [vmem:[#allocation2 + $0x8] sm:$0xff] }
 0x82f   :  { %2525 = vmatpush3.msra.mxu1 %v3015_v3  ;;  %2532 = vmatprep.mubr.msk.f32.mxu1 %vm2927_vm2, %v2926_v5 }
 0x830   :  { %2526 = vmatprep.subr.mxu1 %v2926_v5 }
 0x831   :  { %2527 = vmatpush3.msra.mxu1 %v3032_v8 }
 0x832   :  { %2528 = vmatprep.subr.mxu1 %v2926_v5 }
 0x833   :  { %2529 = vmatpush3.msra.mxu1 %v3041_v10 }
 0x834   :  { %2530 = vmatprep.subr.mxu1 %v2926_v5 }
 0x835   :  { %2531 = vmatpush3.msra.mxu1 %v3047_v11 }
 0x836   :  { %2546 = vmatprep.subr.mxu1 %v2926_v5 }
 0x8ee   :  { %v590_v27 = vpop.f32.mrf.mxu1 }
 0x8ef   :  { %v594_v28 = vadd.f32 %v590_v27, %v181_v26  ;;  %v1040_v26 = vld [vmem:[#allocation2 + $0x10] sm:$0xff] }
 0x8f0   :  { %v2512_v29 = vpop.f32.mrf.mxu1 }
 0x8f1   :  { %2721 = vtanh.f32 %v594_v28  ;;  %v2284_v31 = vmul.f32 -1.442695, %v594_v28 }
 0x8f3   :  { %2723 = vpow2.f32 %v2284_v31 }
 0x8fe   :  { %v2722_v30 = vpop.eup %2721 }
 0x8ff   :  { %604 = vrot.lane.b32.xlu1 %v2722_v30, %s2928_s28  ;;  %v196_v30 = vadd.f32 %v3086_v18, %v3088_v19 }
 0x900   :  { %v2724_v32 = vpop.eup %2723 }
 0x901   :  { %v598_v33 = vadd.f32 1.0, %v2724_v32 }
 0x903   :  { %2725 = vrcp.f32 %v598_v33 }
 0x910   :  { %v2726_v34 = vpop.eup %2725 }
 0x911   :  { %v602_v37 = vmul.f32 %v2726_v34, %v510_v21  ;;  %v2295_v21 = vld [vmem:[%s3500_s5 + $0x30] sm:$0xff] }
 0x971   :  { %v605_v35 = vpop.permute.xlu1 %604 }
 0x972   :  { %v607_v36 = vmul.f32 %v2726_v34, %v605_v35 }
 0x974   :  { %609 = vrot.lane.b32.xlu0 %v607_v36, %s2929_s13 }
 0x9e6   :  { %v610_v38 = vpop.permute.xlu0 %609 }
 0x9e7   :  { %v612_v39 = vadd.f32 %v610_v38, %v602_v37 }
 0x9e9   :  { %2727 = vtanh.f32 %v612_v39 }
 0x9f6   :  { %v2728_v40 = vpop.eup %2727 }
 0x9f7   :  { %615 = vrot.lane.b32.xlu1 %v2728_v40, %s2928_s28 }
 0xa69   :  { %v616_v41 = vpop.permute.xlu1 %615 }
 0xa6a   :  { %v618_v42 = vmul.f32 %v2726_v34, %v616_v41 }
 0xa6c   :  { %620 = vrot.lane.b32.xlu0 %v618_v42, %s2929_s13 }
 0xade   :  { %v621_v43 = vpop.permute.xlu0 %620 }
 0xadf   :  { %623 = vst.msk [vmem:[#allocation2 + $0x18] sm:$0xff] %vm210_vm3, %v621_v43  ;;  %2522 = vmatmul.mubr.msk.f32.vlgmr.msra.gmra.mxu0 %vm210_vm3, %v621_v43 }
 0xae0   :  { %2536 = vmatpush3.msra.mxu0 %v3015_v3  ;;  %2543 = vmatprep.mubr.msk.f32.mxu0 %vm2927_vm2, %v2926_v5 }
 0xae1   :  { %2537 = vmatprep.subr.mxu0 %v2926_v5 }
 0xae2   :  { %2538 = vmatpush3.msra.mxu0 %v3032_v8 }
 0xae3   :  { %2539 = vmatprep.subr.mxu0 %v2926_v5 }
 0xae4   :  { %2540 = vmatpush3.msra.mxu0 %v3041_v10 }
 0xae5   :  { %2541 = vmatprep.subr.mxu0 %v2926_v5 }
 0xae6   :  { %2542 = vmatpush3.msra.mxu0 %v3047_v11  ;;  %v1041_v27 = vld [vmem:[#allocation2 + $0x18] sm:$0xff] }
 0xae7   :  { %2557 = vmatprep.subr.mxu0 %v2296_v9 }
 0xb9f   :  { %v692_v45 = vpop.f32.mrf.mxu0 }
 0xba0   :  { %v696_v46 = vadd.f32 %v692_v45, %v186_v44  ;;  %v3224_v44 = vld [vmem:[#allocation3 + $0x38] sm:$0xff]  ;;  %v3227_v45 = vld [vmem:[#allocation3 + $0x30] sm:$0xff] }
 0xba1   :  { %v2523_v47 = vpop.f32.mrf.mxu0 }
 0xba2   :  { %2729 = vtanh.f32 %v696_v46  ;;  %v2286_v49 = vmul.f32 -1.442695, %v696_v46  ;;  %v3231_v46 = vld [vmem:[#allocation3 + $0x28] sm:$0xff]  ;;  %v3235_v47 = vld [vmem:[#allocation3 + $0x20] sm:$0xff] }
 0xba4   :  { %2731 = vpow2.f32 %v2286_v49 }
 0xbaf   :  { %v2730_v48 = vpop.eup %2729 }
 0xbb0   :  { %706 = vrot.lane.b32.xlu1 %v2730_v48, %s2928_s28 }
 0xbb1   :  { %v2732_v50 = vpop.eup %2731 }
 0xbb2   :  { %v700_v51 = vadd.f32 1.0, %v2732_v50  ;;  %v2308_v50 = vld [vmem:[%s3497_s2 + $0x8] sm:$0xff] }
 0xbb4   :  { %2733 = vrcp.f32 %v700_v51 }
 0xbc1   :  { %v2734_v52 = vpop.eup %2733 }
 0xbc2   :  { %v704_v55 = vmul.f32 %v2734_v52, %v612_v39 }
 0xc22   :  { %v707_v53 = vpop.permute.xlu1 %706 }
 0xc23   :  { %v709_v54 = vmul.f32 %v2734_v52, %v707_v53 }
 0xc25   :  { %711 = vrot.lane.b32.xlu0 %v709_v54, %s2929_s13  ;;  %v201_v54 = vadd.f32 %v3081_v16, %v3086_v18 }
 0xc97   :  { %v712_v56 = vpop.permute.xlu0 %711 }
 0xc98   :  { %v714_v14 = vadd.f32 %v712_v56, %v704_v55 }
 0xc9a   :  { %2735 = vtanh.f32 %v714_v14 }
 0xca7   :  { %v2736_v57 = vpop.eup %2735 }
 0xca8   :  { %717 = vrot.lane.b32.xlu1 %v2736_v57, %s2928_s28 }
 0xd1a   :  { %v718_v58 = vpop.permute.xlu1 %717 }
 0xd1b   :  { %v720_v59 = vmul.f32 %v2734_v52, %v718_v58  ;;  %v2307_v52 = vld [vmem:[%s3496_s1 + $0x8] sm:$0xff]  ;;  %s2930_s1 = smov 96  }
 0xd1d   :  { %722 = vrot.lane.b32.xlu0 %v720_v59, %s2929_s13  ;;  %v3279_v59 = vld [vmem:[%s3501_s6 + $0x1] ss:$0 sm:$0xff]  ;;  %s2932_s6 = smov [#allocation7]  }
 0xd1e   :  { %s2249_s27 = sshll.u32 %s2932_s6, 4  ;;  %s2250_s27 = int_to_ptr.vmem [resolvable:$true] %s2249_s27 }
 0xd8f   :  { %v723_v60 = vpop.permute.xlu0 %722 }
 0xd90   :  { %725 = vst.msk [vmem:[#allocation2 + $0x20] sm:$0xff] %vm210_vm3, %v723_v60  ;;  %2533 = vmatmul.mubr.msk.f32.vlgmr.msra.gmra.mxu1 %vm210_vm3, %v723_v60 }
 0xd91   :  { %2547 = vmatpush3.msra.mxu1 %v3015_v3  ;;  %2554 = vmatprep.mubr.msk.f32.mxu1 %vm2927_vm2, %v2926_v5  ;;  %v191_v3 = vadd.f32 %v3077_v13, %v3086_v18 }
 0xd92   :  { %2548 = vmatprep.subr.mxu1 %v2926_v5 }
 0xd93   :  { %2549 = vmatpush3.msra.mxu1 %v3032_v8 }
 0xd94   :  { %2550 = vmatprep.subr.mxu1 %v2926_v5 }
 0xd95   :  { %2551 = vmatpush3.msra.mxu1 %v3041_v10 }
 0xd96   :  { %2552 = vmatprep.subr.mxu1 %v2926_v5 }
 0xd97   :  { %2553 = vmatpush3.msra.mxu1 %v3047_v11  ;;  %v1042_v28 = vld [vmem:[#allocation2 + $0x20] sm:$0xff] }
 0xd98   :  { %2577 = vmatprep.subr.mxu1 %v2926_v5 }
 0xe50   :  { %v794_v61 = vpop.f32.mrf.mxu1 }
 0xe51   :  { %v798_v62 = vadd.f32 %v794_v61, %v191_v3 }
 0xe52   :  { %v2534_v63 = vpop.f32.mrf.mxu1 }
 0xe53   :  { %2737 = vtanh.f32 %v798_v62  ;;  %v2288_v8 = vmul.f32 -1.442695, %v798_v62 }
 0xe55   :  { %2739 = vpow2.f32 %v2288_v8 }
 0xe60   :  { %v2738_v0 = vpop.eup %2737 }
 0xe61   :  { %808 = vrot.lane.b32.xlu1 %v2738_v0, %s2928_s28 }
 0xe62   :  { %v2740_v1 = vpop.eup %2739 }
 0xe63   :  { %v802_v10 = vadd.f32 1.0, %v2740_v1 }
 0xe65   :  { %2741 = vrcp.f32 %v802_v10 }
 0xe72   :  { %v2742_v2 = vpop.eup %2741 }
 0xe73   :  { %v806_v6 = vmul.f32 %v2742_v2, %v714_v14 }
 0xed3   :  { %v809_v4 = vpop.permute.xlu1 %808 }
 0xed4   :  { %v811_v11 = vmul.f32 %v2742_v2, %v809_v4 }
 0xed6   :  { %813 = vrot.lane.b32.xlu0 %v811_v11, %s2929_s13 }
 0xf48   :  { %v814_v7 = vpop.permute.xlu0 %813 }
 0xf49   :  { %v816_v13 = vadd.f32 %v814_v7, %v806_v6 }
 0xf4b   :  { %2743 = vtanh.f32 %v816_v13 }
 0xf58   :  { %v2744_v12 = vpop.eup %2743 }
 0xf59   :  { %819 = vrot.lane.b32.xlu1 %v2744_v12, %s2928_s28 }
 0xfcb   :  { %v820_v15 = vpop.permute.xlu1 %819 }
 0xfcc   :  { %v822_v17 = vmul.f32 %v2742_v2, %v820_v15 }
 0xfce   :  { %824 = vrot.lane.b32.xlu0 %v822_v17, %s2929_s13 }
0x1040   :  { %v825_v20 = vpop.permute.xlu0 %824 }
0x1041   :  { %827 = vst.msk [vmem:[#allocation2 + $0x28] sm:$0xff] %vm210_vm3, %v825_v20  ;;  %2544 = vmatmul.mubr.msk.f32.vlgmr.msra.gmra.mxu0 %vm210_vm3, %v825_v20 }
0x1042   :  { %2558 = vmatpush3.msra.mxu0 %v2296_v9  ;;  %2565 = vmatprep.mubr.msk.f32.mxu0 %vm210_vm3, %v1038_v22 }
0x1043   :  { %2559 = vmatprep.subr.mxu0 %v2295_v21 }
0x1044   :  { %2560 = vmatpush3.msra.mxu0 %v2295_v21 }
0x1045   :  { %2561 = vmatprep.subr.mxu0 %v2294_v23 }
0x1046   :  { %2562 = vmatpush3.msra.mxu0 %v2294_v23 }
0x1047   :  { %2563 = vmatprep.subr.mxu0 %v2293_v24 }
0x1048   :  { %2564 = vmatpush3.msra.mxu0 %v2293_v24  ;;  %v1043_v29 = vld [vmem:[#allocation2 + $0x28] sm:$0xff] }
0x1049   :  { %2566 = vmatmul.mubr.msk.f32.vlgmr.msra.gmra.mxu0 %vm210_vm3, %v1039_v25  ;;  %2599 = vmatprep.subr.mxu0 %v2926_v5 }
0x104a   :  { %2568 = vmatprep.mubr.msk.f32.mxu0 %vm210_vm3, %v1040_v26  ;;  %2600 = vmatpush3.msra.mxu0 %v3224_v44 }
0x104b   :  { %2601 = vmatprep.subr.mxu0 %v2926_v5 }
0x104c   :  { %2602 = vmatpush3.msra.mxu0 %v3227_v45 }
0x104d   :  { %2569 = vmatmul.mubr.msk.f32.gmra.mxu0 %vm210_vm3, %v1041_v27  ;;  %2603 = vmatprep.subr.mxu0 %v2926_v5 }
0x104e   :  { %2571 = vmatprep.mubr.msk.f32.mxu0 %vm210_vm3, %v1042_v28  ;;  %2604 = vmatpush3.msra.mxu0 %v3231_v46 }
0x104f   :  { %2605 = vmatprep.subr.mxu0 %v2926_v5 }
0x1050   :  { %2606 = vmatpush3.msra.mxu0 %v3235_v47 }
0x1051   :  { %2572 = vmatmul.mubr.msk.f32.gmra.mxu0 %vm210_vm3, %v1043_v29  ;;  %2621 = vmatprep.subr.mxu0 %v2926_v5 }
0x1101   :  { %v896_v31 = vpop.f32.mrf.mxu0 }
0x1102   :  { %v900_v32 = vadd.f32 %v896_v31, %v196_v30 }
0x1103   :  { %v2545_v33 = vpop.f32.mrf.mxu0 }
0x1104   :  { %2745 = vtanh.f32 %v900_v32  ;;  %v2290_v35 = vmul.f32 -1.442695, %v900_v32 }
0x1106   :  { %2747 = vpow2.f32 %v2290_v35 }
0x1109   :  { %v3274_v55 = vpop.f32.mrf.mxu0 }
0x110a   :  { %v1155_v31 = vadd.f32 %v3274_v55, %v3279_v59 }
0x110b   :  { %v1149_v58 = vpop.f32.mrf.mxu0 }
0x110c   :  { %v1150_v60 = vadd.f32 %v3279_v59, %v1149_v58 }
0x1111   :  { %v2746_v34 = vpop.eup %2745 }
0x1112   :  { %910 = vrot.lane.b32.xlu1 %v2746_v34, %s2928_s28 }
0x1113   :  { %v2748_v36 = vpop.eup %2747 }
0x1114   :  { %v904_v37 = vadd.f32 1.0, %v2748_v36 }
0x1116   :  { %2749 = vrcp.f32 %v904_v37 }
0x1123   :  { %v2750_v38 = vpop.eup %2749 }
0x1124   :  { %v908_v41 = vmul.f32 %v2750_v38, %v816_v13 }
0x1184   :  { %v911_v39 = vpop.permute.xlu1 %910 }
0x1185   :  { %v913_v40 = vmul.f32 %v2750_v38, %v911_v39 }
0x1187   :  { %915 = vrot.lane.b32.xlu0 %v913_v40, %s2929_s13 }
0x11f9   :  { %v916_v42 = vpop.permute.xlu0 %915 }
0x11fa   :  { %v3220_v19 = vadd.f32 %v916_v42, %v908_v41 }
0x11fc   :  { %2751 = vtanh.f32 %v3220_v19 }
0x1209   :  { %v2752_v43 = vpop.eup %2751 }
0x120a   :  { %921 = vrot.lane.b32.xlu1 %v2752_v43, %s2928_s28 }
0x127c   :  { %v922_v48 = vpop.permute.xlu1 %921 }
0x127d   :  { %v924_v49 = vmul.f32 %v2750_v38, %v922_v48 }
0x127f   :  { %926 = vrot.lane.b32.xlu0 %v924_v49, %s2929_s13 }
0x1283   :  { %1279 = vrot.lane.b32.xlu0 %v2308_v50, %s2929_s13 }
0x12f1   :  { %v927_v51 = vpop.permute.xlu0 %926 }
0x12f2   :  { %929 = vst.msk [vmem:[#allocation2 + $0x30] sm:$0xff] %vm210_vm3, %v927_v51  ;;  %2555 = vmatmul.mubr.msk.f32.vlgmr.msra.gmra.mxu1 %vm210_vm3, %v927_v51 }
0x12f3   :  { %2578 = vmatpush3.msra.mxu1 %v3224_v44  ;;  %2585 = vmatprep.mubr.msk.f32.mxu1 %vm2927_vm2, %v2926_v5 }
0x12f4   :  { %2579 = vmatprep.subr.mxu1 %v2926_v5 }
0x12f5   :  { %2580 = vmatpush3.msra.mxu1 %v3227_v45  ;;  %v1280_v2 = vpop.permute.xlu0 %1279 }
0x12f6   :  { %2581 = vmatprep.subr.mxu1 %v2926_v5 }
0x12f7   :  { %2582 = vmatpush3.msra.mxu1 %v3231_v46 }
0x12f8   :  { %2583 = vmatprep.subr.mxu1 %v2926_v5 }
0x12f9   :  { %2584 = vmatpush3.msra.mxu1 %v3235_v47  ;;  %v1044_v53 = vld [vmem:[#allocation2 + $0x30] sm:$0xff] }
0x12fa   :  { %2586 = vmatmul.mubr.msk.f32.vlgmr.msra.gmra.mxu1 %vm210_vm3, %v2307_v52  ;;  %2574 = vmatprep.mubr.msk.f32.mxu0 %vm210_vm3, %v1044_v53 }
0x12fb   :  { %2588 = vmatprep.subr.mxu1 %v2926_v5  ;;  %2596 = vmatprep.mubr.msk.f32.mxu1 %vm2927_vm2, %v2926_v5 }
0x12fc   :  { %2589 = vmatpush3.msra.mxu1 %v3224_v44 }
0x12fd   :  { %2590 = vmatprep.subr.mxu1 %v2926_v5 }
0x12fe   :  { %2591 = vmatpush3.msra.mxu1 %v3227_v45 }
0x12ff   :  { %2592 = vmatprep.subr.mxu1 %v2926_v5 }
0x1300   :  { %2593 = vmatpush3.msra.mxu1 %v3231_v46 }
0x1301   :  { %2594 = vmatprep.subr.mxu1 %v2926_v5 }
0x1302   :  { %2595 = vmatpush3.msra.mxu1 %v3235_v47 }
0x1303   :  { %2610 = vmatprep.subr.mxu1 %v2926_v5 }
0x13b2   :  { %v998_v56 = vpop.f32.mrf.mxu1 }
0x13b3   :  { %v1002_v14 = vadd.f32 %v998_v56, %v201_v54  ;;  %v2570_v54 = vpop.f32.mrf.mxu0 }
0x13b4   :  { %v2556_v57 = vpop.f32.mrf.mxu1 }
0x13b5   :  { %v2292_v9 = vmul.f32 -1.442695, %v1002_v14  ;;  %v1159_v55 = vpop.f32.mrf.mxu0 }
0x13b7   :  { %v3329_v56 = vpop.f32.mrf.mxu0 }
0x13ba   :  { %v1266_v3 = vpop.f32.mrf.mxu1 }
0x13bb   :  { %v1270_v61 = vadd.f32 %v1266_v3, %v1150_v60  ;;  %v1160_v60 = vadd.f32 %v3279_v59, %v1159_v55 }
0x13bc   :  { %v2587_v62 = vpop.f32.mrf.mxu1 }
0x13bd   :  { %2753 = vtanh.f32 %v1270_v61  ;;  %v2310_v16 = vmul.f32 -1.442695, %v1270_v61 }
0x13bf   :  { %2755 = vpow2.f32 %v2310_v16 }
0x13ca   :  { %v2754_v63 = vpop.eup %2753 }
0x13cb   :  { %1284 = vrot.lane.b32.xlu1 %v2754_v63, %s2928_s28 }
0x13cc   :  { %v2756_v18 = vpop.eup %2755 }
0x13cd   :  { %v1274_v0 = vadd.f32 1.0, %v2756_v18 }
0x13cf   :  { %2757 = vrcp.f32 %v1274_v0 }
0x13dc   :  { %v2758_v8 = vpop.eup %2757 }
0x13dd   :  { %v1282_v4 = vmul.f32 %v2758_v8, %v1280_v2 }
0x143d   :  { %v1285_v1 = vpop.permute.xlu1 %1284 }
0x143e   :  { %v1287_v10 = vmul.f32 %v2758_v8, %v1285_v1 }
0x1440   :  { %1289 = vrot.lane.b32.xlu1 %v1287_v10, %s2929_s13 }
0x14b2   :  { %v1290_v11 = vpop.permute.xlu1 %1289 }
0x14b3   :  { %v1292_v6 = vadd.f32 %v1290_v11, %v1282_v4 }
0x14b5   :  { %2759 = vtanh.f32 %v1292_v6 }
0x14b6   :  { %2761 = vtanh.f32 %v1002_v14  ;;  %v3331_v14 = vpop.f32.mrf.mxu0 }
0x14b7   :  { %2763 = vpow2.f32 %v2292_v9 }
0x14c2   :  { %v2760_v7 = vpop.eup %2759 }
0x14c3   :  { %1295 = vrot.lane.b32.xlu0 %v2760_v7, %s2928_s28  ;;  %v2762_v13 = vpop.eup %2761 }
0x14c4   :  { %v2764_v12 = vpop.eup %2763 }
0x14c5   :  { %v1006_v15 = vadd.f32 1.0, %v2764_v12  ;;  %v1165_v12 = vadd.f32 %v2570_v54, %v3279_v59 }
0x14c7   :  { %1012 = vrot.lane.b32.xlu0 %v2762_v13, %s2928_s28  ;;  %2765 = vrcp.f32 %v1006_v15 }
0x14d4   :  { %v2766_v21 = vpop.eup %2765 }
0x14d5   :  { %v1010_v25 = vmul.f32 %v2766_v21, %v3220_v19 }
0x1535   :  { %v1296_v17 = vpop.permute.xlu0 %1295 }
0x1536   :  { %v1298_v20 = vmul.f32 %v2758_v8, %v1296_v17 }
0x1538   :  { %1300 = vrot.lane.b32.xlu1 %v1298_v20, %s2929_s13 }
0x1539   :  { %v1013_v22 = vpop.permute.xlu0 %1012 }
0x153a   :  { %v1015_v23 = vmul.f32 %v2766_v21, %v1013_v22 }
0x153c   :  { %1017 = vrot.lane.b32.xlu0 %v1015_v23, %s2929_s13 }
0x15aa   :  { %v1301_v24 = vpop.permute.xlu1 %1300 }
0x15ab   :  { %1303 = vst.msk [vmem:[#allocation2] sm:$0xff] %vm210_vm3, %v1301_v24  ;;  %2597 = vmatmul.mubr.msk.f32.vlgmr.msra.gmra.mxu1 %vm210_vm3, %v1301_v24 }
0x15ac   :  { %2611 = vmatpush3.msra.mxu1 %v3224_v44  ;;  %2618 = vmatprep.mubr.msk.f32.mxu1 %vm2927_vm2, %v2926_v5 }
0x15ad   :  { %2612 = vmatprep.subr.mxu1 %v2926_v5 }
0x15ae   :  { %v1018_v26 = vpop.permute.xlu0 %1017  ;;  %2613 = vmatpush3.msra.mxu1 %v3227_v45 }
0x15af   :  { %v3296_v27 = vadd.f32 %v1018_v26, %v1010_v25  ;;  %2614 = vmatprep.subr.mxu1 %v2926_v5 }
0x15b0   :  { %2615 = vmatpush3.msra.mxu1 %v3231_v46 }
0x15b1   :  { %2767 = vtanh.f32 %v3296_v27  ;;  %2616 = vmatprep.subr.mxu1 %v2926_v5 }
0x15b2   :  { %2617 = vmatpush3.msra.mxu1 %v3235_v47 }
0x15b3   :  { %2632 = vmatprep.subr.mxu1 %v2926_v5 }
0x15be   :  { %v2768_v28 = vpop.eup %2767 }
0x15bf   :  { %1023 = vrot.lane.b32.xlu0 %v2768_v28, %s2928_s28 }
0x1631   :  { %v1024_v29 = vpop.permute.xlu0 %1023 }
0x1632   :  { %v1026_v30 = vmul.f32 %v2766_v21, %v1024_v29 }
0x1634   :  { %1028 = vrot.lane.b32.xlu0 %v1026_v30, %s2929_s13 }
0x166b   :  { %v1372_v32 = vpop.f32.mrf.mxu1 }
0x166c   :  { %v1376_v33 = vadd.f32 %v1372_v32, %v1155_v31 }
0x166d   :  { %v2598_v34 = vpop.f32.mrf.mxu1 }
0x166e   :  { %2769 = vtanh.f32 %v1376_v33  ;;  %v2312_v38 = vmul.f32 -1.442695, %v1376_v33 }
0x1670   :  { %2771 = vpow2.f32 %v2312_v38 }
0x167b   :  { %v2770_v35 = vpop.eup %2769 }
0x167c   :  { %1386 = vrot.lane.b32.xlu1 %v2770_v35, %s2928_s28 }
0x167d   :  { %v2772_v39 = vpop.eup %2771 }
0x167e   :  { %v1380_v40 = vadd.f32 1.0, %v2772_v39 }
0x1680   :  { %2773 = vrcp.f32 %v1380_v40 }
0x168d   :  { %v2774_v41 = vpop.eup %2773 }
0x168e   :  { %v1384_v43 = vmul.f32 %v2774_v41, %v1292_v6 }
0x16a6   :  { %v1029_v36 = vpop.permute.xlu0 %1028 }
0x16a7   :  { %1031 = vst.msk [vmem:[#allocation2 + $0x38] sm:$0xff] %vm210_vm3, %v1029_v36  ;;  %1032 = vst.msk [vmem:[#allocation6] sm:$0xff] %vm210_vm3, %v1029_v36  ;;  %v1170_v36 = vadd.f32 %v3279_v59, %v3331_v14 }
0x16ae   :  { %v1045_v37 = vld [vmem:[#allocation2 + $0x38] sm:$0xff] }
0x16af   :  { %2575 = vmatmul.mubr.msk.f32.gmra.mxu0 %vm210_vm3, %v1045_v37 }
0x16b0   :  { %2607 = vmatprep.mubr.msk.f32.mxu0 %vm2927_vm2, %v2926_v5 }
0x16ee   :  { %v1387_v42 = vpop.permute.xlu1 %1386 }
0x16ef   :  { %v1389_v19 = vmul.f32 %v2774_v41, %v1387_v42 }
0x16f1   :  { %1391 = vrot.lane.b32.xlu1 %v1389_v19, %s2929_s13 }
0x1763   :  { %v1392_v48 = vpop.permute.xlu1 %1391 }
0x1764   :  { %v1394_v49 = vadd.f32 %v1392_v48, %v1384_v43 }
0x1766   :  { %2775 = vtanh.f32 %v1394_v49 }
0x176f   :  { %v3333_v57 = vpop.f32.mrf.mxu0 }
0x1771   :  { %v3335_v58 = vpop.f32.mrf.mxu0 }
0x1773   :  { %v2776_v50 = vpop.eup %2775 }
0x1774   :  { %1397 = vrot.lane.b32.xlu1 %v2776_v50, %s2928_s28 }
0x17e6   :  { %v1398_v51 = vpop.permute.xlu1 %1397 }
0x17e7   :  { %v1400_v52 = vmul.f32 %v2774_v41, %v1398_v51 }
0x17e9   :  { %1402 = vrot.lane.b32.xlu1 %v1400_v52, %s2929_s13 }
0x185b   :  { %v1403_v53 = vpop.permute.xlu1 %1402 }
0x185c   :  { %1405 = vst.msk [vmem:[#allocation2 + $0x8] sm:$0xff] %vm210_vm3, %v1403_v53  ;;  %2608 = vmatmul.mubr.msk.f32.vlgmr.msra.gmra.mxu0 %vm210_vm3, %v1403_v53 }
0x185d   :  { %2622 = vmatpush3.msra.mxu0 %v3224_v44  ;;  %2629 = vmatprep.mubr.msk.f32.mxu0 %vm2927_vm2, %v2926_v5 }
0x185e   :  { %2623 = vmatprep.subr.mxu0 %v2926_v5 }
0x185f   :  { %2624 = vmatpush3.msra.mxu0 %v3227_v45 }
0x1860   :  { %2625 = vmatprep.subr.mxu0 %v2926_v5 }
0x1861   :  { %2626 = vmatpush3.msra.mxu0 %v3231_v46 }
0x1862   :  { %2627 = vmatprep.subr.mxu0 %v2926_v5 }
0x1863   :  { %2628 = vmatpush3.msra.mxu0 %v3235_v47 }
0x1864   :  { %2643 = vmatprep.subr.mxu0 %v2926_v5 }
0x191c   :  { %v1474_v3 = vpop.f32.mrf.mxu0 }
0x191d   :  { %v1478_v61 = vadd.f32 %v1474_v3, %v1160_v60  ;;  %v1175_v60 = vadd.f32 %v3329_v56, %v3279_v59 }
0x191e   :  { %v2609_v62 = vpop.f32.mrf.mxu0 }
0x191f   :  { %2777 = vtanh.f32 %v1478_v61  ;;  %v2314_v16 = vmul.f32 -1.442695, %v1478_v61 }
0x1921   :  { %2779 = vpow2.f32 %v2314_v16 }
0x192c   :  { %v2778_v63 = vpop.eup %2777 }
0x192d   :  { %1488 = vrot.lane.b32.xlu0 %v2778_v63, %s2928_s28 }
0x192e   :  { %v2780_v18 = vpop.eup %2779 }
0x192f   :  { %v1482_v0 = vadd.f32 1.0, %v2780_v18 }
0x1931   :  { %2781 = vrcp.f32 %v1482_v0 }
0x193e   :  { %v2782_v8 = vpop.eup %2781 }
0x193f   :  { %v1486_v2 = vmul.f32 %v2782_v8, %v1394_v49 }
0x199f   :  { %v1489_v1 = vpop.permute.xlu0 %1488 }
0x19a0   :  { %v1491_v10 = vmul.f32 %v2782_v8, %v1489_v1 }
0x19a2   :  { %1493 = vrot.lane.b32.xlu1 %v1491_v10, %s2929_s13 }
0x1a14   :  { %v1494_v4 = vpop.permute.xlu1 %1493 }
0x1a15   :  { %v1496_v11 = vadd.f32 %v1494_v4, %v1486_v2 }
0x1a17   :  { %2783 = vtanh.f32 %v1496_v11 }
0x1a24   :  { %v2784_v6 = vpop.eup %2783 }
0x1a25   :  { %1499 = vrot.lane.b32.xlu0 %v2784_v6, %s2928_s28  ;;  %v2026_v6 = vld [vmem:[#allocation2] sm:$0xff] }
0x1a97   :  { %v1500_v7 = vpop.permute.xlu0 %1499 }
0x1a98   :  { %v1502_v13 = vmul.f32 %v2782_v8, %v1500_v7  ;;  %v2037_v8 = vld [vmem:[%s3503_s8 + $0x18] sm:$0xff]  ;;  %v2035_v7 = vld [vmem:[%s3503_s8 + $0x8] sm:$0xff] }
0x1a9a   :  { %1504 = vrot.lane.b32.xlu1 %v1502_v13, %s2929_s13  ;;  %v2034_v13 = vld [vmem:[%s3503_s8] sm:$0xff] }
0x1b0c   :  { %v1505_v9 = vpop.permute.xlu1 %1504 }
0x1b0d   :  { %1507 = vst.msk [vmem:[#allocation2 + $0x10] sm:$0xff] %vm210_vm3, %v1505_v9  ;;  %2619 = vmatmul.mubr.msk.f32.vlgmr.msra.gmra.mxu1 %vm210_vm3, %v1505_v9  ;;  %v2027_v9 = vld [vmem:[#allocation2 + $0x8] sm:$0xff] }
0x1b0e   :  { %2633 = vmatpush3.msra.mxu1 %v3224_v44  ;;  %2640 = vmatprep.mubr.msk.f32.mxu1 %vm2927_vm2, %v2926_v5 }
0x1b0f   :  { %2634 = vmatprep.subr.mxu1 %v2926_v5 }
0x1b10   :  { %2635 = vmatpush3.msra.mxu1 %v3227_v45 }
0x1b11   :  { %2636 = vmatprep.subr.mxu1 %v2926_v5 }
0x1b12   :  { %2637 = vmatpush3.msra.mxu1 %v3231_v46 }
0x1b13   :  { %2638 = vmatprep.subr.mxu1 %v2926_v5 }
0x1b14   :  { %2639 = vmatpush3.msra.mxu1 %v3235_v47 }
0x1b15   :  { %2654 = vmatprep.subr.mxu1 %v2926_v5 }
0x1bcd   :  { %v1576_v15 = vpop.f32.mrf.mxu1 }
0x1bce   :  { %v1580_v17 = vadd.f32 %v1576_v15, %v1165_v12  ;;  %v2028_v12 = vld [vmem:[#allocation2 + $0x10] sm:$0xff] }
0x1bcf   :  { %v2620_v20 = vpop.f32.mrf.mxu1 }
0x1bd0   :  { %2785 = vtanh.f32 %v1580_v17  ;;  %v2316_v22 = vmul.f32 -1.442695, %v1580_v17 }
0x1bd2   :  { %2787 = vpow2.f32 %v2316_v22 }
0x1bdd   :  { %v2786_v21 = vpop.eup %2785 }
0x1bde   :  { %1590 = vrot.lane.b32.xlu0 %v2786_v21, %s2928_s28  ;;  %v1180_v21 = vadd.f32 %v3279_v59, %v3335_v58 }
0x1bdf   :  { %v2788_v23 = vpop.eup %2787 }
0x1be0   :  { %v1584_v24 = vadd.f32 1.0, %v2788_v23 }
0x1be2   :  { %2789 = vrcp.f32 %v1584_v24 }
0x1bef   :  { %v2790_v25 = vpop.eup %2789 }
0x1bf0   :  { %v1588_v29 = vmul.f32 %v2790_v25, %v1496_v11  ;;  %v2036_v11 = vld [vmem:[%s3503_s8 + $0x10] sm:$0xff] }
0x1c50   :  { %v1591_v26 = vpop.permute.xlu0 %1590 }
0x1c51   :  { %v1593_v28 = vmul.f32 %v2790_v25, %v1591_v26 }
0x1c53   :  { %1595 = vrot.lane.b32.xlu1 %v1593_v28, %s2929_s13 }
0x1cc5   :  { %v1596_v30 = vpop.permute.xlu1 %1595 }
0x1cc6   :  { %v1598_v31 = vadd.f32 %v1596_v30, %v1588_v29 }
0x1cc8   :  { %2791 = vtanh.f32 %v1598_v31 }
0x1cd5   :  { %v2792_v32 = vpop.eup %2791 }
0x1cd6   :  { %1601 = vrot.lane.b32.xlu0 %v2792_v32, %s2928_s28 }
0x1d48   :  { %v1602_v33 = vpop.permute.xlu0 %1601 }
0x1d49   :  { %v1604_v34 = vmul.f32 %v2790_v25, %v1602_v33  ;;  %v3421_v25 = vld [vmem:[%s3504_s9] ss:$0 sm:$0xff] }
0x1d4b   :  { %1606 = vrot.lane.b32.xlu1 %v1604_v34, %s2929_s13 }
0x1dbd   :  { %v1607_v35 = vpop.permute.xlu1 %1606 }
0x1dbe   :  { %1609 = vst.msk [vmem:[#allocation2 + $0x18] sm:$0xff] %vm210_vm3, %v1607_v35  ;;  %2630 = vmatmul.mubr.msk.f32.vlgmr.msra.gmra.mxu0 %vm210_vm3, %v1607_v35 }
0x1dbf   :  { %2644 = vmatpush3.msra.mxu0 %v3224_v44  ;;  %2651 = vmatprep.mubr.msk.f32.mxu0 %vm2927_vm2, %v2926_v5 }
0x1dc0   :  { %2645 = vmatprep.subr.mxu0 %v2926_v5 }
0x1dc1   :  { %2646 = vmatpush3.msra.mxu0 %v3227_v45 }
0x1dc2   :  { %2647 = vmatprep.subr.mxu0 %v2926_v5 }
0x1dc3   :  { %2648 = vmatpush3.msra.mxu0 %v3231_v46 }
0x1dc4   :  { %2649 = vmatprep.subr.mxu0 %v2926_v5 }
0x1dc5   :  { %2650 = vmatpush3.msra.mxu0 %v3235_v47  ;;  %v2029_v15 = vld [vmem:[#allocation2 + $0x18] sm:$0xff] }
0x1dc6   :  { %2665 = vmatprep.subr.mxu0 %v2037_v8 }
0x1e7e   :  { %v1678_v37 = vpop.f32.mrf.mxu0 }
0x1e7f   :  { %v1682_v38 = vadd.f32 %v1678_v37, %v1170_v36 }
0x1e80   :  { %v2631_v39 = vpop.f32.mrf.mxu0 }
0x1e81   :  { %2793 = vtanh.f32 %v1682_v38  ;;  %v2318_v41 = vmul.f32 -1.442695, %v1682_v38 }
0x1e83   :  { %2795 = vpow2.f32 %v2318_v41 }
0x1e8e   :  { %v2794_v40 = vpop.eup %2793 }
0x1e8f   :  { %1692 = vrot.lane.b32.xlu0 %v2794_v40, %s2928_s28 }
0x1e90   :  { %v2796_v42 = vpop.eup %2795 }
0x1e91   :  { %v1686_v19 = vadd.f32 1.0, %v2796_v42 }
0x1e93   :  { %2797 = vrcp.f32 %v1686_v19 }
0x1ea0   :  { %v2798_v43 = vpop.eup %2797 }
0x1ea1   :  { %v1690_v50 = vmul.f32 %v2798_v43, %v1598_v31 }
0x1f01   :  { %v1693_v48 = vpop.permute.xlu0 %1692 }
0x1f02   :  { %v1695_v49 = vmul.f32 %v2798_v43, %v1693_v48 }
0x1f04   :  { %1697 = vrot.lane.b32.xlu1 %v1695_v49, %s2929_s13 }
0x1f76   :  { %v1698_v51 = vpop.permute.xlu1 %1697 }
0x1f77   :  { %v1700_v52 = vadd.f32 %v1698_v51, %v1690_v50 }
0x1f79   :  { %2799 = vtanh.f32 %v1700_v52 }
0x1f86   :  { %v2800_v53 = vpop.eup %2799 }
0x1f87   :  { %1703 = vrot.lane.b32.xlu0 %v2800_v53, %s2928_s28 }
0x1ff9   :  { %v1704_v54 = vpop.permute.xlu0 %1703 }
0x1ffa   :  { %v1706_v55 = vmul.f32 %v2798_v43, %v1704_v54 }
0x1ffc   :  { %1708 = vrot.lane.b32.xlu1 %v1706_v55, %s2929_s13 }
0x206e   :  { %v1709_v14 = vpop.permute.xlu1 %1708 }
0x206f   :  { %1711 = vst.msk [vmem:[#allocation2 + $0x20] sm:$0xff] %vm210_vm3, %v1709_v14  ;;  %2641 = vmatmul.mubr.msk.f32.vlgmr.msra.gmra.mxu1 %vm210_vm3, %v1709_v14 }
0x2070   :  { %2655 = vmatpush3.msra.mxu1 %v3224_v44  ;;  %2662 = vmatprep.mubr.msk.f32.mxu1 %vm2927_vm2, %v2926_v5 }
0x2071   :  { %2656 = vmatprep.subr.mxu1 %v2926_v5 }
0x2072   :  { %2657 = vmatpush3.msra.mxu1 %v3227_v45 }
0x2073   :  { %2658 = vmatprep.subr.mxu1 %v2926_v5 }
0x2074   :  { %2659 = vmatpush3.msra.mxu1 %v3231_v46 }
0x2075   :  { %2660 = vmatprep.subr.mxu1 %v2926_v5 }
0x2076   :  { %2661 = vmatpush3.msra.mxu1 %v3235_v47  ;;  %v2030_v17 = vld [vmem:[#allocation2 + $0x20] sm:$0xff] }
0x212f   :  { %v1780_v3 = vpop.f32.mrf.mxu1 }
0x2130   :  { %v1784_v44 = vadd.f32 %v1780_v3, %v1175_v60 }
0x2131   :  { %v2642_v61 = vpop.f32.mrf.mxu1 }
0x2132   :  { %2801 = vtanh.f32 %v1784_v44  ;;  %v2320_v63 = vmul.f32 -1.442695, %v1784_v44 }
0x2134   :  { %2803 = vpow2.f32 %v2320_v63 }
0x213f   :  { %v2802_v62 = vpop.eup %2801 }
0x2140   :  { %1794 = vrot.lane.b32.xlu0 %v2802_v62, %s2928_s28 }
0x2141   :  { %v2804_v45 = vpop.eup %2803 }
0x2142   :  { %v1788_v16 = vadd.f32 1.0, %v2804_v45 }
0x2144   :  { %2805 = vrcp.f32 %v1788_v16 }
0x2151   :  { %v2806_v46 = vpop.eup %2805 }
0x2152   :  { %v1792_v47 = vmul.f32 %v2806_v46, %v1700_v52 }
0x21b2   :  { %v1795_v18 = vpop.permute.xlu0 %1794 }
0x21b3   :  { %v1797_v5 = vmul.f32 %v2806_v46, %v1795_v18 }
0x21b5   :  { %1799 = vrot.lane.b32.xlu1 %v1797_v5, %s2929_s13 }
0x2227   :  { %v1800_v0 = vpop.permute.xlu1 %1799 }
0x2228   :  { %v3391_v56 = vadd.f32 %v1800_v0, %v1792_v47 }
0x222a   :  { %2807 = vtanh.f32 %v3391_v56 }
0x2237   :  { %v2808_v1 = vpop.eup %2807 }
0x2238   :  { %1805 = vrot.lane.b32.xlu0 %v2808_v1, %s2928_s28 }
0x22aa   :  { %v1806_v10 = vpop.permute.xlu0 %1805 }
0x22ab   :  { %v1808_v2 = vmul.f32 %v2806_v46, %v1806_v10 }
0x22ad   :  { %1810 = vrot.lane.b32.xlu1 %v1808_v2, %s2929_s13 }
0x231f   :  { %v1811_v4 = vpop.permute.xlu1 %1810 }
0x2320   :  { %1813 = vst.msk [vmem:[#allocation2 + $0x28] sm:$0xff] %vm210_vm3, %v1811_v4  ;;  %2652 = vmatmul.mubr.msk.f32.vlgmr.msra.gmra.mxu0 %vm210_vm3, %v1811_v4 }
0x2321   :  { %2666 = vmatpush3.msra.mxu0 %v2037_v8  ;;  %2673 = vmatprep.mubr.msk.f32.mxu0 %vm210_vm3, %v2026_v6 }
0x2322   :  { %2667 = vmatprep.subr.mxu0 %v2036_v11 }
0x2323   :  { %2668 = vmatpush3.msra.mxu0 %v2036_v11 }
0x2324   :  { %2669 = vmatprep.subr.mxu0 %v2035_v7 }
0x2325   :  { %2670 = vmatpush3.msra.mxu0 %v2035_v7 }
0x2326   :  { %2671 = vmatprep.subr.mxu0 %v2034_v13 }
0x2327   :  { %2672 = vmatpush3.msra.mxu0 %v2034_v13  ;;  %v2031_v20 = vld [vmem:[#allocation2 + $0x28] sm:$0xff] }
0x2328   :  { %2674 = vmatmul.mubr.msk.f32.vlgmr.msra.gmra.mxu0 %vm210_vm3, %v2027_v9 }
0x2329   :  { %2676 = vmatprep.mubr.msk.f32.mxu0 %vm210_vm3, %v2028_v12 }
0x232c   :  { %2677 = vmatmul.mubr.msk.f32.gmra.mxu0 %vm210_vm3, %v2029_v15 }
0x232d   :  { %2679 = vmatprep.mubr.msk.f32.mxu0 %vm210_vm3, %v2030_v17 }
0x2330   :  { %2680 = vmatmul.mubr.msk.f32.gmra.mxu0 %vm210_vm3, %v2031_v20 }
0x23e0   :  { %v1882_v22 = vpop.f32.mrf.mxu0 }
0x23e1   :  { %v1886_v23 = vadd.f32 %v1882_v22, %v1180_v21 }
0x23e2   :  { %v2653_v24 = vpop.f32.mrf.mxu0 }
0x23e3   :  { %2809 = vtanh.f32 %v1886_v23  ;;  %v2322_v18 = vmul.f32 -1.442695, %v1886_v23 }
0x23e8   :  { %v2675_v26 = vpop.f32.mrf.mxu0 }
0x23e9   :  { %v2141_v28 = vadd.f32 %v2675_v26, %v3421_v25 }
0x23ea   :  { %v2135_v29 = vpop.f32.mrf.mxu0 }
0x23eb   :  { %v2335_v30 = vmul.f32 -1.442695, %v2141_v28  ;;  %v2136_v31 = vadd.f32 %v3421_v25, %v2135_v29 }
0x23ec   :  { %v2678_v32 = vpop.f32.mrf.mxu0 }
0x23ed   :  { %2811 = vpow2.f32 %v2335_v30  ;;  %v2334_v33 = vmul.f32 -1.442695, %v2136_v31  ;;  %v2151_v58 = vadd.f32 %v2678_v32, %v3421_v25 }
0x23ee   :  { %v2145_v34 = vpop.f32.mrf.mxu0 }
0x23ef   :  { %2813 = vpow2.f32 %v2334_v33  ;;  %v2337_v35 = vmul.f32 -1.442695, %v2151_v58  ;;  %v2146_v36 = vadd.f32 %v3421_v25, %v2145_v34 }
0x23f0   :  { %v2810_v37 = vpop.eup %2809  ;;  %v2681_v38 = vpop.f32.mrf.mxu0 }
0x23f1   :  { %2815 = vpow2.f32 %v2337_v35  ;;  %v2336_v39 = vmul.f32 -1.442695, %v2146_v36  ;;  %v2161_v40 = vadd.f32 %v2681_v38, %v3421_v25  ;;  %1896 = vrot.lane.b32.xlu0 %v2810_v37, %s2928_s28 }
0x23f2   :  { %v2155_v41 = vpop.f32.mrf.mxu0 }
0x23f3   :  { %2817 = vpow2.f32 %v2336_v39  ;;  %v2339_v42 = vmul.f32 -1.442695, %v2161_v40  ;;  %v2156_v19 = vadd.f32 %v3421_v25, %v2155_v41 }
0x23f5   :  { %v2338_v43 = vmul.f32 -1.442695, %v2156_v19  ;;  %2819 = vpow2.f32 %v2339_v42 }
0x23f7   :  { %2821 = vpow2.f32 %v2338_v43 }
0x23fa   :  { %v2812_v48 = vpop.eup %2811 }
0x23fb   :  { %v2199_v49 = vadd.f32 1.0, %v2812_v48 }
0x23fc   :  { %v2814_v50 = vpop.eup %2813 }
0x23fd   :  { %2823 = vrcp.f32 %v2199_v49  ;;  %v2198_v51 = vadd.f32 1.0, %v2814_v50 }
0x23fe   :  { %v2816_v52 = vpop.eup %2815 }
0x23ff   :  { %2825 = vrcp.f32 %v2198_v51  ;;  %v2201_v53 = vadd.f32 1.0, %v2816_v52 }
0x2400   :  { %v2818_v54 = vpop.eup %2817 }
0x2401   :  { %2827 = vrcp.f32 %v2201_v53  ;;  %v2200_v55 = vadd.f32 1.0, %v2818_v54 }
0x2402   :  { %v2820_v14 = vpop.eup %2819 }
0x2403   :  { %2829 = vrcp.f32 %v2200_v55  ;;  %v2203_v3 = vadd.f32 1.0, %v2820_v14 }
0x2404   :  { %v2822_v60 = vpop.eup %2821 }
0x2405   :  { %v2202_v44 = vadd.f32 1.0, %v2822_v60  ;;  %2831 = vrcp.f32 %v2203_v3 }
0x2407   :  { %2833 = vrcp.f32 %v2202_v44 }
0x2408   :  { %2835 = vpow2.f32 %v2322_v18 }
0x240a   :  { %v2824_v61 = vpop.eup %2823 }
0x240b   :  { %2223 = vst.msk [vmem:[%s3505_s10 + $0x8] sm:$0xff] %vm70_vm1, %v2824_v61 }
0x240c   :  { %v2826_v62 = vpop.eup %2825 }
0x240d   :  { %2222 = vst.msk [vmem:[%s3505_s10] sm:$0xff] %vm70_vm1, %v2826_v62 }
0x240e   :  { %v2828_v63 = vpop.eup %2827 }
0x240f   :  { %2225 = vst.msk [vmem:[%s3505_s10 + $0x18] sm:$0xff] %vm70_vm1, %v2828_v63 }
0x2410   :  { %v2830_v45 = vpop.eup %2829 }
0x2411   :  { %2224 = vst.msk [vmem:[%s3505_s10 + $0x10] sm:$0xff] %vm70_vm1, %v2830_v45 }
0x2412   :  { %v2832_v16 = vpop.eup %2831 }
0x2413   :  { %2227 = vst.msk [vmem:[%s3505_s10 + $0x28] sm:$0xff] %vm70_vm1, %v2832_v16 }
0x2414   :  { %v2834_v46 = vpop.eup %2833 }
0x2415   :  { %2226 = vst.msk [vmem:[%s3505_s10 + $0x20] sm:$0xff] %vm70_vm1, %v2834_v46  ;;  %v2836_v5 = vpop.eup %2835 }
0x2416   :  { %v1890_v47 = vadd.f32 1.0, %v2836_v5 }
0x2418   :  { %2837 = vrcp.f32 %v1890_v47 }
0x2425   :  { %v2838_v0 = vpop.eup %2837 }
0x2426   :  { %v1894_v10 = vmul.f32 %v2838_v0, %v3391_v56  ;;  %v1185_v56 = vadd.f32 %v3333_v57, %v3279_v59 }
0x2463   :  { %v1897_v8 = vpop.permute.xlu0 %1896 }
0x2464   :  { %v1899_v1 = vmul.f32 %v2838_v0, %v1897_v8 }
0x2466   :  { %1901 = vrot.lane.b32.xlu1 %v1899_v1, %s2929_s13 }
0x24d8   :  { %v1902_v2 = vpop.permute.xlu1 %1901 }
0x24d9   :  { %v1904_v4 = vadd.f32 %v1902_v2, %v1894_v10 }
0x24db   :  { %2839 = vtanh.f32 %v1904_v4 }
0x24e8   :  { %v2840_v11 = vpop.eup %2839 }
0x24e9   :  { %1907 = vrot.lane.b32.xlu0 %v2840_v11, %s2928_s28 }
0x255b   :  { %v1908_v6 = vpop.permute.xlu0 %1907 }
0x255c   :  { %v1910_v7 = vmul.f32 %v2838_v0, %v1908_v6 }
0x255e   :  { %1912 = vrot.lane.b32.xlu1 %v1910_v7, %s2929_s13 }
0x25d0   :  { %v1913_v13 = vpop.permute.xlu1 %1912 }
0x25d1   :  { %1915 = vst.msk [vmem:[#allocation2 + $0x30] sm:$0xff] %vm210_vm3, %v1913_v13  ;;  %2663 = vmatmul.mubr.msk.f32.vlgmr.msra.gmra.mxu1 %vm210_vm3, %v1913_v13 }
0x25d8   :  { %v2032_v9 = vld [vmem:[#allocation2 + $0x30] sm:$0xff] }
0x25d9   :  { %2682 = vmatprep.mubr.msk.f32.mxu0 %vm210_vm3, %v2032_v9 }
0x2691   :  { %v1984_v12 = vpop.f32.mrf.mxu1 }
0x2692   :  { %v1988_v15 = vadd.f32 %v1984_v12, %v1185_v56 }
0x2693   :  { %v2664_v17 = vpop.f32.mrf.mxu1 }
0x2694   :  { %2841 = vtanh.f32 %v1988_v15  ;;  %v2324_v21 = vmul.f32 -1.442695, %v1988_v15 }
0x2696   :  { %2843 = vpow2.f32 %v2324_v21 }
0x26a1   :  { %v2842_v20 = vpop.eup %2841 }
0x26a2   :  { %1998 = vrot.lane.b32.xlu0 %v2842_v20, %s2928_s28 }
0x26a3   :  { %v2844_v22 = vpop.eup %2843 }
0x26a4   :  { %v1992_v23 = vadd.f32 1.0, %v2844_v22 }
0x26a6   :  { %2845 = vrcp.f32 %v1992_v23 }
0x26b3   :  { %v2846_v24 = vpop.eup %2845 }
0x26b4   :  { %v1996_v29 = vmul.f32 %v2846_v24, %v1904_v4 }
0x2714   :  { %v1999_v26 = vpop.permute.xlu0 %1998 }
0x2715   :  { %v2001_v28 = vmul.f32 %v2846_v24, %v1999_v26 }
0x2717   :  { %2003 = vrot.lane.b32.xlu1 %v2001_v28, %s2929_s13 }
0x2789   :  { %v2004_v30 = vpop.permute.xlu1 %2003 }
0x278a   :  { %v2006_v59 = vadd.f32 %v2004_v30, %v1996_v29 }
0x278c   :  { %2847 = vtanh.f32 %v2006_v59 }
0x2799   :  { %v2848_v57 = vpop.eup %2847 }
0x279a   :  { %2009 = vrot.lane.b32.xlu0 %v2848_v57, %s2928_s28  ;;  %s2931_s28 = smov [#allocation6]  }
0x279b   :  { %s2237_s26 = sshll.u32 %s2931_s28, 4  ;;  %s2238_s26 = int_to_ptr.vmem [resolvable:$true] %s2237_s26 }
0x279c   :  { %p2882_p6 = scmp.lt.s32.totalorder %s2238_s26, %s2238_s26 }
0x279e   :  { %1034 = vrot.lane.b32.xlu0 %v3296_v27, %s2930_s1 }
0x280c   :  { %v2010_v31 = vpop.permute.xlu0 %2009 }
0x280d   :  { %v2012_v32 = vmul.f32 %v2846_v24, %v2010_v31 }
0x280f   :  { %2014 = vrot.lane.b32.xlu1 %v2012_v32, %s2929_s13  ;;  %s2877_s13 = scalar_lea.vmem %s2238_s26, 256 }
0x2810   :  { %v1035_v33 = vpop.permute.xlu0 %1034  ;;  %p2878_p5 = scmp.ne.s32.totalorder %s2238_s26, %s2877_s13  ;;  %p2883_p7 = scmp.lt.s32.totalorder %s2877_s13, %s2877_s13 }
0x2811   :  { %1037 = vst.msk [vmem:[#allocation7] sm:$0xff] %vm210_vm3, %v1035_v33 }
0x2812   :  { %p2884_p8 = por %p2883_p7, %p2882_p6 }
0x2813   :  { %2021 = vrot.lane.b32.xlu1 %v2006_v59, %s2930_s1 }
0x2814   :  { %p2885_p9 = pnand %p2884_p8, %p2878_p5 }
0x2881   :  { %v2015_v58 = vpop.permute.xlu1 %2014 }
0x2882   :  { %2017 = vst.msk [vmem:[#allocation2 + $0x38] sm:$0xff] %vm210_vm3, %v2015_v58  ;;  %2019 = vst.msk [vmem:[#allocation6 + $0x8] sm:$0xff] %vm210_vm3, %v2015_v58 }
0x2885   :  { %v2022_v34 = vpop.permute.xlu1 %2021 }
0x2886   :  { %2025 = vst.msk [vmem:[#allocation7 + $0x8] sm:$0xff] %vm210_vm3, %v2022_v34 }
0x2889   :  { %v2033_v35 = vld [vmem:[#allocation2 + $0x38] sm:$0xff] }
0x288a   :  { %2683 = vmatmul.mubr.msk.f32.gmra.mxu0 %vm210_vm3, %v2033_v35 }
0x288b   :  { %2888 = shalt.err (!%p2885_p9)
}
0x288c   :  { %2243 = dma.vmem_to_hbm [thread:$0]  %s2238_s26, 256, %s3506_s11, [#allocation5], %s2924_s24, %s2924_s24, %s2925_s25  }
0x288d   :  { %s2897_s4 = scalar_lea.vmem %s2250_s27, 256  ;;  %p2902_p11 = scmp.lt.s32.totalorder %s2250_s27, %s2250_s27 }
0x288e   :  { %p2898_p10 = scmp.ne.s32.totalorder %s2250_s27, %s2897_s4  ;;  %p2903_p12 = scmp.lt.s32.totalorder %s2897_s4, %s2897_s4 }
0x2890   :  { %p2904_p13 = por %p2903_p12, %p2902_p11 }
0x2892   :  { %p2905_p0 = pnand %p2904_p13, %p2898_p10 }
0x2894   :  { %2908 = shalt.err (!%p2905_p0)
}
0x2895   :  { %2255 = dma.vmem_to_hbm [thread:$0]  %s2250_s27, 256, %s3507_s12, [#allocation8], %s2924_s24, %s2924_s24, %s2925_s25  }
0x294a   :  { %v2684_v27 = vpop.f32.mrf.mxu0 }
0x294b   :  { %v2171_v36 = vadd.f32 %v2684_v27, %v3421_v25 }
0x294c   :  { %v2165_v37 = vpop.f32.mrf.mxu0 }
0x294d   :  { %v2341_v38 = vmul.f32 -1.442695, %v2171_v36  ;;  %v2166_v39 = vadd.f32 %v3421_v25, %v2165_v37 }
0x294f   :  { %2849 = vpow2.f32 %v2341_v38  ;;  %v2340_v40 = vmul.f32 -1.442695, %v2166_v39 }
0x2951   :  { %2851 = vpow2.f32 %v2340_v40 }
0x295c   :  { %v2850_v41 = vpop.eup %2849 }
0x295d   :  { %v2205_v42 = vadd.f32 1.0, %v2850_v41 }
0x295e   :  { %v2852_v19 = vpop.eup %2851 }
0x295f   :  { %2853 = vrcp.f32 %v2205_v42  ;;  %v2204_v43 = vadd.f32 1.0, %v2852_v19 }
0x2961   :  { %2855 = vrcp.f32 %v2204_v43 }
0x296c   :  { %v2854_v48 = vpop.eup %2853 }
0x296d   :  { %2229 = vst.msk [vmem:[%s3505_s10 + $0x38] sm:$0xff] %vm70_vm1, %v2854_v48 }
0x296e   :  { %v2856_v49 = vpop.eup %2855 }
0x296f   :  { %2228 = vst.msk [vmem:[%s3505_s10 + $0x30] sm:$0xff] %vm70_vm1, %v2856_v49 }
0x2970   :  { %2919 = dma.done.wait [#allocation5], 256  }
0x2971   :  { %2920 = vsyncadd [#allocation5], 4294967040 }
0x2972   :  { %2921 = dma.done.wait [#allocation8], 256  }
0x2973   :  { %2922 = vsyncadd [#allocation8], 4294967040 }
0x2974   :  { %2264 = vsyncpa [#allocation4], 1 }
0x2975   :  { %2265 = vsyncpa [#allocation5], 1 }
0x2976   :  { %2266 = vsyncpa [#allocation8], 1 }

</bundles_post_ra>
